<compile_context>
chip_gen: v6e
topology: v6e:2x2x1
jax: 0.10.0
libtpu: 0.0.40
codegen_flags: <defaults>
</compile_context>

<pallas_src>
import functools
import math

import jax
import jax.numpy as jnp
from jax.experimental import pallas as pl
from jax.experimental.pallas import tpu as pltpu

# ---- small config consistent with the Qwen2 module structure ----
HIDDEN = 64
N_LAYERS = 2
N_HEADS = 4
N_KV_HEADS = 2
HEAD_DIM = HIDDEN // N_HEADS          # 16
HALF = HEAD_DIM // 2                  # 8
N_REP = N_HEADS // N_KV_HEADS         # 2
INTERMEDIATE = 128
VOCAB = 256
RMS_EPS = 1e-6
ROPE_THETA = 10000.0                  # precompute_theta_pos_frequencies default
MAX_BATCH = 4
MAX_POS = 32

Q_DIM = N_HEADS * HEAD_DIM            # 64
KV_DIM = N_KV_HEADS * HEAD_DIM        # 32
QKV_DIM = Q_DIM + 2 * KV_DIM          # 128  (fused q|k|v projection width)
K_OFF = Q_DIM                         # 64
V_OFF = Q_DIM + KV_DIM                # 96
CACHE_LANES = MAX_BATCH * KV_DIM      # 128  (lane-dense cache row width)


# ---------------------------- fused full-forward kernel ----------------------------

def _qwen2_forward_kernel(
    pos_ref,            # SMEM (1,) int32 — runtime decode position
    h0_ref,             # (B, HIDDEN)     — embedded token
    rope_ref,           # (2, HALF)       — row0: cos, row1: sin (for this pos)
    ln1_ref,            # (1, HIDDEN)     — per-layer (stacked axis squeezed)
    wqkv_ref,           # (HIDDEN, QKV_DIM)
    bqkv_ref,           # (1, QKV_DIM)
    wo_ref,             # (HIDDEN, HIDDEN)
    ln2_ref,            # (1, HIDDEN)
    wgu_ref,            # (HIDDEN, 2*INTERMEDIATE)  fused gate|up
    wd_ref,             # (INTERMEDIATE, HIDDEN)
    fnw_ref,            # (1, HIDDEN)     — final RMSNorm weight
    lmw_ref,            # (HIDDEN, VOCAB) — lm_head
    ck_hbm,             # ANY (N_LAYERS, MAX_POS, CACHE_LANES)  kv cache (k)
    cv_hbm,             # ANY (N_LAYERS, MAX_POS, CACHE_LANES)  kv cache (v)
    logits_ref,         # out (B, VOCAB)
    ck_out_hbm,         # out ANY (aliased with ck_hbm)
    cv_out_hbm,         # out ANY (aliased with cv_hbm)
    h_scr,              # VMEM (B, HIDDEN)         hidden-state carry
    rot_scr,            # VMEM (B, QKV_DIM)        rotated qkv assembly
    qh_scr,             # VMEM (B*N_HEADS, HEAD_DIM) per-head q rows
    attn_scr,           # VMEM (B, Q_DIM)          attention output assembly
    k_vmem,             # VMEM (MAX_POS, CACHE_LANES) this layer's k slab
    v_vmem,             # VMEM (MAX_POS, CACHE_LANES) this layer's v slab
    dma_sems,           # DMA semaphores (4,)
    *, batch, eps):
    f32 = jnp.float32
    l = pl.program_id(0)
    last = pl.num_programs(0) - 1
    pos = pos_ref[0]

    # Kick off this layer's KV-cache slab fetch early (overlaps norm/qkv/rope).
    cp_k_in = pltpu.make_async_copy(ck_hbm.at[l], k_vmem, dma_sems.at[0])
    cp_v_in = pltpu.make_async_copy(cv_hbm.at[l], v_vmem, dma_sems.at[1])
    cp_k_in.start()
    cp_v_in.start()

    @pl.when(l == 0)
    def _():
        h_scr[...] = h0_ref[...].astype(f32)

    h = h_scr[...]                                                    # (B, D)

    # ---- input_layernorm (RMSNorm) ----
    x = h * jax.lax.rsqrt(jnp.mean(h * h, axis=-1, keepdims=True) + eps) * ln1_ref[...]

    # ---- fused QKV projection (+bias) ----
    qkv = jnp.dot(x, wqkv_ref[...], preferred_element_type=f32) + bqkv_ref[...]

    # ---- RoPE, elementwise (de-interleaved pair convention; see init_params) ----
    # Each q/k head block is laid out [x_even(8) | x_odd(8)]; rotation:
    #   out_e = x_e*cos - x_o*sin ;  out_o = x_e*sin + x_o*cos
    cos = rope_ref[0:1, :]                                            # (1, HALF)
    sin = rope_ref[1:2, :]                                            # (1, HALF)
    rot_scr[...] = qkv                                                # v section passes through
    for hh in range(N_HEADS + N_KV_HEADS):                            # q heads + k heads
        o = hh * HEAD_DIM
        xe = qkv[:, o:o + HALF]
        xo = qkv[:, o + HALF:o + HEAD_DIM]
        rot_scr[:, o:o + HALF] = xe * cos - xo * sin
        rot_scr[:, o + HALF:o + HEAD_DIM] = xe * sin + xo * cos
    rot = rot_scr[...]                                                # (B, QKV_DIM)

    # ---- KV-cache update: write only row `pos`; caches aliased in HBM ----
    cp_k_in.wait()
    cp_v_in.wait()
    for b in range(batch):
        k_vmem[pl.ds(pos, 1), b * KV_DIM:(b + 1) * KV_DIM] = rot[b:b + 1, K_OFF:K_OFF + KV_DIM]
        v_vmem[pl.ds(pos, 1), b * KV_DIM:(b + 1) * KV_DIM] = rot[b:b + 1, V_OFF:V_OFF + KV_DIM]
    cp_k_out = pltpu.make_async_copy(
        k_vmem.at[pl.ds(pos, 1), :], ck_out_hbm.at[l, pl.ds(pos, 1), :], dma_sems.at[2])
    cp_v_out = pltpu.make_async_copy(
        v_vmem.at[pl.ds(pos, 1), :], cv_out_hbm.at[l, pl.ds(pos, 1), :], dma_sems.at[3])
    cp_k_out.start()
    cp_v_out.start()

    # ---- GQA attention over the cached prefix (dynamic length via masking) ----
    for b in range(batch):
        for hh in range(N_HEADS):
            qh_scr[b * N_HEADS + hh:b * N_HEADS + hh + 1, :] = (
                rot[b:b + 1, hh * HEAD_DIM:(hh + 1) * HEAD_DIM])
    q_all = qh_scr[...]                                               # (B*H, hd)

    scale = 1.0 / math.sqrt(HEAD_DIM)
    t_ids = jax.lax.broadcasted_iota(jnp.int32, (1, MAX_POS), 1)
    valid = t_ids <= pos                                              # (1, T)
    neg_big = jnp.float32(-1e30)
    for b in range(batch):
        for g in range(N_KV_HEADS):
            col = b * KV_DIM + g * HEAD_DIM
            keys = k_vmem[:, col:col + HEAD_DIM]                      # (T, hd)
            vals = v_vmem[:, col:col + HEAD_DIM]                      # (T, hd)
            r0 = b * N_HEADS + g * N_REP
            q_bg = q_all[r0:r0 + N_REP, :]                            # (N_REP, hd)
            s = jax.lax.dot_general(q_bg, keys, (((1,), (1,)), ((), ())),
                                    preferred_element_type=f32) * scale   # (N_REP, T)
            s = jnp.where(valid, s, neg_big)
            m = jnp.max(s, axis=-1, keepdims=True)
            p = jnp.exp(s - m)
            p = p / jnp.sum(p, axis=-1, keepdims=True)
            o_bg = jnp.dot(p, vals, preferred_element_type=f32)       # (N_REP, hd)
            for r in range(N_REP):
                hcol = (g * N_REP + r) * HEAD_DIM
                attn_scr[b:b + 1, hcol:hcol + HEAD_DIM] = o_bg[r:r + 1, :]

    # ---- o_proj (no bias) + residual ----
    h1 = h + jnp.dot(attn_scr[...], wo_ref[...], preferred_element_type=f32)

    # ---- post_attention_layernorm + fused SwiGLU MLP + residual ----
    x2 = h1 * jax.lax.rsqrt(jnp.mean(h1 * h1, axis=-1, keepdims=True) + eps) * ln2_ref[...]
    gu = jnp.dot(x2, wgu_ref[...], preferred_element_type=f32)        # (B, 2*I)
    gate = gu[:, :INTERMEDIATE]
    up = gu[:, INTERMEDIATE:]
    act = gate * jax.nn.sigmoid(gate) * up
    h2 = h1 + jnp.dot(act, wd_ref[...], preferred_element_type=f32)
    h_scr[...] = h2

    # ---- final RMSNorm + lm_head, fused into the last layer's grid step ----
    @pl.when(l == last)
    def _():
        xn = h2 * jax.lax.rsqrt(jnp.mean(h2 * h2, axis=-1, keepdims=True) + eps) * fnw_ref[...]
        logits_ref[...] = jnp.dot(xn, lmw_ref[...], preferred_element_type=f32)

    # Cache-row write-back must be done before the scratch slabs are reused.
    cp_k_out.wait()
    cp_v_out.wait()


# ---------------------------- JAX wrapper ----------------------------

def qwen2_decode_step(tokens, pos, params, cache_k, cache_v):
    B, T = tokens.shape
    assert T == 1, "Using kv cache, only one token at a time can be processed"
    assert B <= MAX_BATCH

    h0 = jnp.take(params["embed"], tokens[:, 0], axis=0)              # (B, HIDDEN)

    # RoPE cos/sin at this position (same freqs as precompute_theta_pos_frequencies).
    inv = 1.0 / (ROPE_THETA ** (jnp.arange(0, HEAD_DIM, 2, dtype=jnp.float32) / HEAD_DIM))
    ang = pos.astype(jnp.float32) * inv                                # (HALF,)
    rope = jnp.stack([jnp.cos(ang), jnp.sin(ang)], axis=0)             # (2, HALF)

    pos_arr = jnp.reshape(pos, (1,)).astype(jnp.int32)

    def stacked(*dims):
        zeros = (0,) * len(dims)
        return pl.BlockSpec((None,) + dims, lambda l, _z=zeros: (l,) + _z)

    def const(*dims):
        zeros = (0,) * len(dims)
        return pl.BlockSpec(dims, lambda l, _z=zeros: _z)

    kern = functools.partial(_qwen2_forward_kernel, batch=B, eps=RMS_EPS)

    logits, ck_new, cv_new = pl.pallas_call(
        kern,
        out_shape=(
            jax.ShapeDtypeStruct((B, VOCAB), jnp.float32),
            jax.ShapeDtypeStruct(cache_k.shape, cache_k.dtype),
            jax.ShapeDtypeStruct(cache_v.shape, cache_v.dtype),
        ),
        grid=(N_LAYERS,),
        in_specs=[
            pl.BlockSpec(memory_space=pltpu.MemorySpace.SMEM),   # pos
            const(B, HIDDEN),                                    # h0
            const(2, HALF),                                      # rope cos/sin
            stacked(1, HIDDEN),                                  # ln1
            stacked(HIDDEN, QKV_DIM),                            # wqkv
            stacked(1, QKV_DIM),                                 # bqkv
            stacked(HIDDEN, HIDDEN),                             # wo
            stacked(1, HIDDEN),                                  # ln2
            stacked(HIDDEN, 2 * INTERMEDIATE),                   # wgu (gate|up)
            stacked(INTERMEDIATE, HIDDEN),                       # wd
            const(1, HIDDEN),                                    # final norm w
            const(HIDDEN, VOCAB),                                # lm_head
            pl.BlockSpec(memory_space=pl.ANY),                   # cache_k (HBM)
            pl.BlockSpec(memory_space=pl.ANY),                   # cache_v (HBM)
        ],
        out_specs=(
            const(B, VOCAB),                                     # logits
            pl.BlockSpec(memory_space=pl.ANY),                   # cache_k out (aliased)
            pl.BlockSpec(memory_space=pl.ANY),                   # cache_v out (aliased)
        ),
        scratch_shapes=(
            pltpu.VMEM((B, HIDDEN), jnp.float32),                # h carry
            pltpu.VMEM((B, QKV_DIM), jnp.float32),               # rotated qkv
            pltpu.VMEM((B * N_HEADS, HEAD_DIM), jnp.float32),    # per-head q
            pltpu.VMEM((B, Q_DIM), jnp.float32),                 # attn output
            pltpu.VMEM((MAX_POS, CACHE_LANES), jnp.float32),     # k slab
            pltpu.VMEM((MAX_POS, CACHE_LANES), jnp.float32),     # v slab
            pltpu.SemaphoreType.DMA((4,)),
        ),
        input_output_aliases={12: 1, 13: 2},
        compiler_params=pltpu.CompilerParams(
            dimension_semantics=("arbitrary",)),
    )(pos_arr, h0, rope,
      params["ln1"], params["wqkv"], params["bqkv"], params["wo"],
      params["ln2"], params["wgu"], params["wd"],
      params["final_norm"], params["lm_head_w"],
      cache_k, cache_v)

    return logits.reshape(B, 1, VOCAB), ck_new, cv_new


qwen2_forward = jax.jit(qwen2_decode_step)   # pos is a runtime scalar -> single compile


# ---------------------------- params / caches ----------------------------

def _deinterleave(w, n_heads):
    """Permute each head's output dims from [0,1,...,15] to [evens | odds].

    Applied to q/k projection columns (and biases) so that in-kernel RoPE can
    rotate with contiguous 8-lane slices.  q.k dot products (and hence the
    model's outputs) are unchanged by this fixed permutation.
    """
    idx = jnp.concatenate([jnp.arange(0, HEAD_DIM, 2), jnp.arange(1, HEAD_DIM, 2)])
    full = jnp.concatenate([h * HEAD_DIM + idx for h in range(n_heads)])
    return jnp.take(w, full, axis=-1)


def init_params(key):
    def nrm(k, shape, scale=0.02):
        return scale * jax.random.normal(k, shape, dtype=jnp.float32)

    keys = jax.random.split(key, 2 + N_LAYERS)
    wqkv_l, bqkv_l, wo_l, wgu_l, wd_l = [], [], [], [], []
    for l in range(N_LAYERS):
        lk = jax.random.split(keys[2 + l], 10)
        wq, bq = nrm(lk[0], (HIDDEN, Q_DIM)), nrm(lk[1], (Q_DIM,))
        wk, bk = nrm(lk[2], (HIDDEN, KV_DIM)), nrm(lk[3], (KV_DIM,))
        wv, bv = nrm(lk[4], (HIDDEN, KV_DIM)), nrm(lk[5], (KV_DIM,))
        wq, bq = _deinterleave(wq, N_HEADS), _deinterleave(bq, N_HEADS)
        wk, bk = _deinterleave(wk, N_KV_HEADS), _deinterleave(bk, N_KV_HEADS)
        wqkv_l.append(jnp.concatenate([wq, wk, wv], axis=1))           # (64, 128)
        bqkv_l.append(jnp.concatenate([bq, bk, bv]).reshape(1, QKV_DIM))
        wo_l.append(nrm(lk[6], (HIDDEN, HIDDEN)))
        wgu_l.append(jnp.concatenate([nrm(lk[7], (HIDDEN, INTERMEDIATE)),
                                      nrm(lk[8], (HIDDEN, INTERMEDIATE))], axis=1))
        wd_l.append(nrm(lk[9], (INTERMEDIATE, HIDDEN)))

    ones_norm = jnp.ones((N_LAYERS, 1, HIDDEN), jnp.float32)
    # TODO(synk): for v6e/v7x, store the stacked weights in bfloat16 (cast at the
    # matmul operands) to halve the per-layer weight DMA.
    return {
        "embed": nrm(keys[0], (VOCAB, HIDDEN)),
        "lm_head_w": nrm(keys[1], (HIDDEN, VOCAB)),
        "final_norm": jnp.ones((1, HIDDEN), jnp.float32),
        "ln1": ones_norm,
        "ln2": ones_norm,
        "wqkv": jnp.stack(wqkv_l),
        "bqkv": jnp.stack(bqkv_l),
        "wo": jnp.stack(wo_l),
        "wgu": jnp.stack(wgu_l),
        "wd": jnp.stack(wd_l),
    }


def init_kv_caches(dtype=jnp.float32):
    shape = (N_LAYERS, MAX_POS, CACHE_LANES)
    return jnp.zeros(shape, dtype), jnp.zeros(shape, dtype)


# ---------------------------- demo ----------------------------

if __name__ == "__main__":
    key = jax.random.PRNGKey(0)
    pkey, tkey = jax.random.split(key)
    params = init_params(pkey)
    cache_k, cache_v = init_kv_caches()

    B = 2
    tokens = jax.random.randint(tkey, (B, 1), 0, VOCAB, dtype=jnp.int32)

    # Short greedy decode: pos is a runtime scalar, caches threaded through,
    # so all three steps reuse one compiled executable.
    logits = None
    for step in range(3):
        logits, cache_k, cache_v = qwen2_forward(
            tokens, jnp.array(step, dtype=jnp.int32), params, cache_k, cache_v)
        tokens = jnp.argmax(logits[:, -1, :], axis=-1).astype(jnp.int32)[:, None]

    jax.block_until_ready(logits)
    assert logits.shape == (B, 1, VOCAB)
    assert bool(jnp.all(jnp.isfinite(logits)))
    print("KERNEL_OK")
</pallas_src>

<mosaic_0001>
module attributes {stable_mosaic.version = 11 : i64} {
  func.func @_qwen2_forward_kernel(%arg0: i32, %arg1: memref<1xi32, #tpu.memory_space<smem>>, %arg2: memref<2x64xf32, #tpu.memory_space<vmem>>, %arg3: memref<2x8xf32, #tpu.memory_space<vmem>>, %arg4: memref<1x1x64xf32, #tpu.memory_space<vmem>>, %arg5: memref<1x64x128xf32, #tpu.memory_space<vmem>>, %arg6: memref<1x1x128xf32, #tpu.memory_space<vmem>>, %arg7: memref<1x64x64xf32, #tpu.memory_space<vmem>>, %arg8: memref<1x1x64xf32, #tpu.memory_space<vmem>>, %arg9: memref<1x64x256xf32, #tpu.memory_space<vmem>>, %arg10: memref<1x128x64xf32, #tpu.memory_space<vmem>>, %arg11: memref<1x64xf32, #tpu.memory_space<vmem>>, %arg12: memref<64x256xf32, #tpu.memory_space<vmem>>, %arg13: memref<2x32x128xf32, #tpu.memory_space<any>>, %arg14: memref<2x32x128xf32, #tpu.memory_space<any>>, %arg15: memref<2x256xf32, #tpu.memory_space<vmem>>, %arg16: memref<2x32x128xf32, #tpu.memory_space<any>>, %arg17: memref<2x32x128xf32, #tpu.memory_space<any>>, %arg18: memref<2x64xf32, #tpu.memory_space<vmem>>, %arg19: memref<2x128xf32, #tpu.memory_space<vmem>>, %arg20: memref<8x16xf32, #tpu.memory_space<vmem>>, %arg21: memref<2x64xf32, #tpu.memory_space<vmem>>, %arg22: memref<32x128xf32, #tpu.memory_space<vmem>>, %arg23: memref<32x128xf32, #tpu.memory_space<vmem>>, %arg24: memref<4x!tpu.dma_semaphore, #tpu.memory_space<semaphore_mem>>) attributes {dimension_semantics = [#tpu.dimension_semantics<arbitrary>], iteration_bounds = array<i64: 2>, scalar_prefetch = 0 : i64, scratch_operands = 7 : i64, tpu.core_type = #tpu.core_type<tc>, window_params = [{transform_indices = @transform_0, window_bounds = array<i64: 1>}, {pipeline_mode = #tpu.pipeline_mode<synchronous>, transform_indices = @transform_1, window_bounds = array<i64: 2, 64>}, {pipeline_mode = #tpu.pipeline_mode<synchronous>, transform_indices = @transform_2, window_bounds = array<i64: 2, 8>}, {transform_indices = @transform_3, window_bounds = array<i64: 1, 1, 64>}, {transform_indices = @transform_4, window_bounds = array<i64: 1, 64, 128>}, {transform_indices = @transform_5, window_bounds = array<i64: 1, 1, 128>}, {transform_indices = @transform_6, window_bounds = array<i64: 1, 64, 64>}, {transform_indices = @transform_7, window_bounds = array<i64: 1, 1, 64>}, {transform_indices = @transform_8, window_bounds = array<i64: 1, 64, 256>}, {transform_indices = @transform_9, window_bounds = array<i64: 1, 128, 64>}, {pipeline_mode = #tpu.pipeline_mode<synchronous>, transform_indices = @transform_10, window_bounds = array<i64: 1, 64>}, {pipeline_mode = #tpu.pipeline_mode<synchronous>, transform_indices = @transform_11, window_bounds = array<i64: 64, 256>}, {}, {}, {pipeline_mode = #tpu.pipeline_mode<synchronous>, transform_indices = @transform_14, window_bounds = array<i64: 2, 256>}, {}, {}]} {
    %c0 = arith.constant 0 : index
    %0 = memref.load %arg1[%c0] : memref<1xi32, #tpu.memory_space<smem>>
    %c0_i32 = arith.constant 0 : i32
    %c0_i32_0 = arith.constant 0 : i32
    %c0_i32_1 = arith.constant 0 : i32
    %1 = tpu.memref_slice %arg13[%arg0, %c0_i32_0, %c0_i32_1] : memref<2x32x128xf32, #tpu.memory_space<any>> -> memref<1x32x128xf32, #tpu.memory_space<any>>
    %2 = tpu.memref_squeeze %1 : memref<1x32x128xf32, #tpu.memory_space<any>> -> memref<32x128xf32, #tpu.memory_space<any>>
    %3 = tpu.memref_slice %arg24[%c0_i32] : memref<4x!tpu.dma_semaphore, #tpu.memory_space<semaphore_mem>> -> memref<1x!tpu.dma_semaphore, #tpu.memory_space<semaphore_mem>>
    %4 = tpu.memref_squeeze %3 : memref<1x!tpu.dma_semaphore, #tpu.memory_space<semaphore_mem>> -> memref<!tpu.dma_semaphore, #tpu.memory_space<semaphore_mem>>
    tpu.enqueue_dma source(%2 : memref<32x128xf32, #tpu.memory_space<any>>) target(%arg22 : memref<32x128xf32, #tpu.memory_space<vmem>>) target_semaphore(%4 : memref<!tpu.dma_semaphore, #tpu.memory_space<semaphore_mem>>)
    %c1_i32 = arith.constant 1 : i32
    %c0_i32_2 = arith.constant 0 : i32
    %c0_i32_3 = arith.constant 0 : i32
    %5 = tpu.memref_slice %arg14[%arg0, %c0_i32_2, %c0_i32_3] : memref<2x32x128xf32, #tpu.memory_space<any>> -> memref<1x32x128xf32, #tpu.memory_space<any>>
    %6 = tpu.memref_squeeze %5 : memref<1x32x128xf32, #tpu.memory_space<any>> -> memref<32x128xf32, #tpu.memory_space<any>>
    %7 = tpu.memref_slice %arg24[%c1_i32] : memref<4x!tpu.dma_semaphore, #tpu.memory_space<semaphore_mem>> -> memref<1x!tpu.dma_semaphore, #tpu.memory_space<semaphore_mem>>
    %8 = tpu.memref_squeeze %7 : memref<1x!tpu.dma_semaphore, #tpu.memory_space<semaphore_mem>> -> memref<!tpu.dma_semaphore, #tpu.memory_space<semaphore_mem>>
    tpu.enqueue_dma source(%6 : memref<32x128xf32, #tpu.memory_space<any>>) target(%arg23 : memref<32x128xf32, #tpu.memory_space<vmem>>) target_semaphore(%8 : memref<!tpu.dma_semaphore, #tpu.memory_space<semaphore_mem>>)
    %c0_i32_4 = arith.constant 0 : i32
    %9 = arith.cmpi eq, %arg0, %c0_i32_4 : i32
    %10 = arith.extui %9 : i1 to i32
    %c0_i32_5 = arith.constant 0 : i32
    %11 = arith.cmpi ne, %10, %c0_i32_5 : i32
    scf.if %11 {
      %c0_153 = arith.constant 0 : index
      %c0_154 = arith.constant 0 : index
      %317 = vector.load %arg2[%c0_153, %c0_154] : memref<2x64xf32, #tpu.memory_space<vmem>>, vector<2x64xf32>
      %c0_155 = arith.constant 0 : index
      %c0_156 = arith.constant 0 : index
      %318 = vector.load %arg18[%c0_155, %c0_156] : memref<2x64xf32, #tpu.memory_space<vmem>>, vector<2x64xf32>
      tpu.vector_store %arg18[%c0_155, %c0_156], %317 {strides = array<i32>} : memref<2x64xf32, #tpu.memory_space<vmem>>, vector<2x64xf32>,
    } else {
    }
    %c0_6 = arith.constant 0 : index
    %c0_7 = arith.constant 0 : index
    %12 = vector.load %arg18[%c0_6, %c0_7] : memref<2x64xf32, #tpu.memory_space<vmem>>, vector<2x64xf32>
    %13 = arith.mulf %12, %12 : vector<2x64xf32>
    %cst = arith.constant dense<0.000000e+00> : vector<2xf32>
    %14 = vector.multi_reduction <add>, %13, %cst [1] : vector<2x64xf32> to vector<2xf32>
    %15 = vector.shape_cast %14 : vector<2xf32> to vector<2x1xf32>
    %cst_8 = arith.constant 6.400000e+01 : f32
    %16 = vector.broadcast %cst_8 : f32 to vector<2x1xf32>
    %17 = arith.divf %15, %16 : vector<2x1xf32>
    %cst_9 = arith.constant 9.99999997E-7 : f32
    %18 = vector.broadcast %cst_9 : f32 to vector<2x1xf32>
    %19 = arith.addf %17, %18 : vector<2x1xf32>
    %20 = math.rsqrt %19 : vector<2x1xf32>
    %21 = vector.broadcast %20 : vector<2x1xf32> to vector<2x64xf32>
    %22 = arith.mulf %12, %21 : vector<2x64xf32>
    %c0_10 = arith.constant 0 : index
    %c0_11 = arith.constant 0 : index
    %c0_12 = arith.constant 0 : index
    %23 = vector.load %arg4[%c0_10, %c0_11, %c0_12] : memref<1x1x64xf32, #tpu.memory_space<vmem>>, vector<1x1x64xf32>
    %24 = vector.shape_cast %23 : vector<1x1x64xf32> to vector<1x64xf32>
    %25 = vector.broadcast %24 : vector<1x64xf32> to vector<2x64xf32>
    %26 = arith.mulf %22, %25 : vector<2x64xf32>
    %c0_13 = arith.constant 0 : index
    %c0_14 = arith.constant 0 : index
    %c0_15 = arith.constant 0 : index
    %27 = vector.load %arg5[%c0_13, %c0_14, %c0_15] : memref<1x64x128xf32, #tpu.memory_space<vmem>>, vector<1x64x128xf32>
    %28 = vector.shape_cast %27 : vector<1x64x128xf32> to vector<64x128xf32>
    %cst_16 = arith.constant dense<0.000000e+00> : vector<2x128xf32>
    %29 = tpu.matmul %26, %28, %cst_16 {dimension_numbers = #tpu.dot_dimension_numbers<[1], [0], [0], [1], [0, 0, 1, 1], [], []>} : vector<2x64xf32>, vector<64x128xf32>, vector<2x128xf32> -> vector<2x128xf32>
    %c0_17 = arith.constant 0 : index
    %c0_18 = arith.constant 0 : index
    %c0_19 = arith.constant 0 : index
    %30 = vector.load %arg6[%c0_17, %c0_18, %c0_19] : memref<1x1x128xf32, #tpu.memory_space<vmem>>, vector<1x1x128xf32>
    %31 = vector.shape_cast %30 : vector<1x1x128xf32> to vector<1x128xf32>
    %32 = vector.broadcast %31 : vector<1x128xf32> to vector<2x128xf32>
    %33 = arith.addf %29, %32 : vector<2x128xf32>
    %c0_20 = arith.constant 0 : index
    %c0_21 = arith.constant 0 : index
    %34 = vector.load %arg3[%c0_20, %c0_21] : memref<2x8xf32, #tpu.memory_space<vmem>>, vector<1x8xf32>
    %c1 = arith.constant 1 : index
    %c0_22 = arith.constant 0 : index
    %35 = vector.load %arg3[%c1, %c0_22] : memref<2x8xf32, #tpu.memory_space<vmem>>, vector<1x8xf32>
    %c0_23 = arith.constant 0 : index
    %c0_24 = arith.constant 0 : index
    %36 = vector.load %arg19[%c0_23, %c0_24] : memref<2x128xf32, #tpu.memory_space<vmem>>, vector<2x128xf32>
    tpu.vector_store %arg19[%c0_23, %c0_24], %33 {strides = array<i32>} : memref<2x128xf32, #tpu.memory_space<vmem>>, vector<2x128xf32>,
    %37 = vector.extract_strided_slice %33 {offsets = [0, 0], sizes = [2, 8], strides = [1, 1]} : vector<2x128xf32> to vector<2x8xf32>
    %38 = vector.extract_strided_slice %33 {offsets = [0, 8], sizes = [2, 8], strides = [1, 1]} : vector<2x128xf32> to vector<2x8xf32>
    %39 = vector.broadcast %34 : vector<1x8xf32> to vector<2x8xf32>
    %40 = arith.mulf %37, %39 : vector<2x8xf32>
    %41 = vector.broadcast %35 : vector<1x8xf32> to vector<2x8xf32>
    %42 = arith.mulf %38, %41 : vector<2x8xf32>
    %43 = arith.subf %40, %42 : vector<2x8xf32>
    %c0_25 = arith.constant 0 : index
    %c0_26 = arith.constant 0 : index
    %44 = vector.load %arg19[%c0_25, %c0_26] : memref<2x128xf32, #tpu.memory_space<vmem>>, vector<2x8xf32>
    tpu.vector_store %arg19[%c0_25, %c0_26], %43 {strides = array<i32>} : memref<2x128xf32, #tpu.memory_space<vmem>>, vector<2x8xf32>,
    %45 = vector.broadcast %35 : vector<1x8xf32> to vector<2x8xf32>
    %46 = arith.mulf %37, %45 : vector<2x8xf32>
    %47 = vector.broadcast %34 : vector<1x8xf32> to vector<2x8xf32>
    %48 = arith.mulf %38, %47 : vector<2x8xf32>
    %49 = arith.addf %46, %48 : vector<2x8xf32>
    %c0_27 = arith.constant 0 : index
    %c8 = arith.constant 8 : index
    %50 = vector.load %arg19[%c0_27, %c8] : memref<2x128xf32, #tpu.memory_space<vmem>>, vector<2x8xf32>
    tpu.vector_store %arg19[%c0_27, %c8], %49 {strides = array<i32>} : memref<2x128xf32, #tpu.memory_space<vmem>>, vector<2x8xf32>,
    %51 = vector.extract_strided_slice %33 {offsets = [0, 16], sizes = [2, 8], strides = [1, 1]} : vector<2x128xf32> to vector<2x8xf32>
    %52 = vector.extract_strided_slice %33 {offsets = [0, 24], sizes = [2, 8], strides = [1, 1]} : vector<2x128xf32> to vector<2x8xf32>
    %53 = vector.broadcast %34 : vector<1x8xf32> to vector<2x8xf32>
    %54 = arith.mulf %51, %53 : vector<2x8xf32>
    %55 = vector.broadcast %35 : vector<1x8xf32> to vector<2x8xf32>
    %56 = arith.mulf %52, %55 : vector<2x8xf32>
    %57 = arith.subf %54, %56 : vector<2x8xf32>
    %c0_28 = arith.constant 0 : index
    %c16 = arith.constant 16 : index
    %58 = vector.load %arg19[%c0_28, %c16] : memref<2x128xf32, #tpu.memory_space<vmem>>, vector<2x8xf32>
    tpu.vector_store %arg19[%c0_28, %c16], %57 {strides = array<i32>} : memref<2x128xf32, #tpu.memory_space<vmem>>, vector<2x8xf32>,
    %59 = vector.broadcast %35 : vector<1x8xf32> to vector<2x8xf32>
    %60 = arith.mulf %51, %59 : vector<2x8xf32>
    %61 = vector.broadcast %34 : vector<1x8xf32> to vector<2x8xf32>
    %62 = arith.mulf %52, %61 : vector<2x8xf32>
    %63 = arith.addf %60, %62 : vector<2x8xf32>
    %c0_29 = arith.constant 0 : index
    %c24 = arith.constant 24 : index
    %64 = vector.load %arg19[%c0_29, %c24] : memref<2x128xf32, #tpu.memory_space<vmem>>, vector<2x8xf32>
    tpu.vector_store %arg19[%c0_29, %c24], %63 {strides = array<i32>} : memref<2x128xf32, #tpu.memory_space<vmem>>, vector<2x8xf32>,
    %65 = vector.extract_strided_slice %33 {offsets = [0, 32], sizes = [2, 8], strides = [1, 1]} : vector<2x128xf32> to vector<2x8xf32>
    %66 = vector.extract_strided_slice %33 {offsets = [0, 40], sizes = [2, 8], strides = [1, 1]} : vector<2x128xf32> to vector<2x8xf32>
    %67 = vector.broadcast %34 : vector<1x8xf32> to vector<2x8xf32>
    %68 = arith.mulf %65, %67 : vector<2x8xf32>
    %69 = vector.broadcast %35 : vector<1x8xf32> to vector<2x8xf32>
    %70 = arith.mulf %66, %69 : vector<2x8xf32>
    %71 = arith.subf %68, %70 : vector<2x8xf32>
    %c0_30 = arith.constant 0 : index
    %c32 = arith.constant 32 : index
    %72 = vector.load %arg19[%c0_30, %c32] : memref<2x128xf32, #tpu.memory_space<vmem>>, vector<2x8xf32>
    tpu.vector_store %arg19[%c0_30, %c32], %71 {strides = array<i32>} : memref<2x128xf32, #tpu.memory_space<vmem>>, vector<2x8xf32>,
    %73 = vector.broadcast %35 : vector<1x8xf32> to vector<2x8xf32>
    %74 = arith.mulf %65, %73 : vector<2x8xf32>
    %75 = vector.broadcast %34 : vector<1x8xf32> to vector<2x8xf32>
    %76 = arith.mulf %66, %75 : vector<2x8xf32>
    %77 = arith.addf %74, %76 : vector<2x8xf32>
    %c0_31 = arith.constant 0 : index
    %c40 = arith.constant 40 : index
    %78 = vector.load %arg19[%c0_31, %c40] : memref<2x128xf32, #tpu.memory_space<vmem>>, vector<2x8xf32>
    tpu.vector_store %arg19[%c0_31, %c40], %77 {strides = array<i32>} : memref<2x128xf32, #tpu.memory_space<vmem>>, vector<2x8xf32>,
    %79 = vector.extract_strided_slice %33 {offsets = [0, 48], sizes = [2, 8], strides = [1, 1]} : vector<2x128xf32> to vector<2x8xf32>
    %80 = vector.extract_strided_slice %33 {offsets = [0, 56], sizes = [2, 8], strides = [1, 1]} : vector<2x128xf32> to vector<2x8xf32>
    %81 = vector.broadcast %34 : vector<1x8xf32> to vector<2x8xf32>
    %82 = arith.mulf %79, %81 : vector<2x8xf32>
    %83 = vector.broadcast %35 : vector<1x8xf32> to vector<2x8xf32>
    %84 = arith.mulf %80, %83 : vector<2x8xf32>
    %85 = arith.subf %82, %84 : vector<2x8xf32>
    %c0_32 = arith.constant 0 : index
    %c48 = arith.constant 48 : index
    %86 = vector.load %arg19[%c0_32, %c48] : memref<2x128xf32, #tpu.memory_space<vmem>>, vector<2x8xf32>
    tpu.vector_store %arg19[%c0_32, %c48], %85 {strides = array<i32>} : memref<2x128xf32, #tpu.memory_space<vmem>>, vector<2x8xf32>,
    %87 = vector.broadcast %35 : vector<1x8xf32> to vector<2x8xf32>
    %88 = arith.mulf %79, %87 : vector<2x8xf32>
    %89 = vector.broadcast %34 : vector<1x8xf32> to vector<2x8xf32>
    %90 = arith.mulf %80, %89 : vector<2x8xf32>
    %91 = arith.addf %88, %90 : vector<2x8xf32>
    %c0_33 = arith.constant 0 : index
    %c56 = arith.constant 56 : index
    %92 = vector.load %arg19[%c0_33, %c56] : memref<2x128xf32, #tpu.memory_space<vmem>>, vector<2x8xf32>
    tpu.vector_store %arg19[%c0_33, %c56], %91 {strides = array<i32>} : memref<2x128xf32, #tpu.memory_space<vmem>>, vector<2x8xf32>,
    %93 = vector.extract_strided_slice %33 {offsets = [0, 64], sizes = [2, 8], strides = [1, 1]} : vector<2x128xf32> to vector<2x8xf32>
    %94 = vector.extract_strided_slice %33 {offsets = [0, 72], sizes = [2, 8], strides = [1, 1]} : vector<2x128xf32> to vector<2x8xf32>
    %95 = vector.broadcast %34 : vector<1x8xf32> to vector<2x8xf32>
    %96 = arith.mulf %93, %95 : vector<2x8xf32>
    %97 = vector.broadcast %35 : vector<1x8xf32> to vector<2x8xf32>
    %98 = arith.mulf %94, %97 : vector<2x8xf32>
    %99 = arith.subf %96, %98 : vector<2x8xf32>
    %c0_34 = arith.constant 0 : index
    %c64 = arith.constant 64 : index
    %100 = vector.load %arg19[%c0_34, %c64] : memref<2x128xf32, #tpu.memory_space<vmem>>, vector<2x8xf32>
    tpu.vector_store %arg19[%c0_34, %c64], %99 {strides = array<i32>} : memref<2x128xf32, #tpu.memory_space<vmem>>, vector<2x8xf32>,
    %101 = vector.broadcast %35 : vector<1x8xf32> to vector<2x8xf32>
    %102 = arith.mulf %93, %101 : vector<2x8xf32>
    %103 = vector.broadcast %34 : vector<1x8xf32> to vector<2x8xf32>
    %104 = arith.mulf %94, %103 : vector<2x8xf32>
    %105 = arith.addf %102, %104 : vector<2x8xf32>
    %c0_35 = arith.constant 0 : index
    %c72 = arith.constant 72 : index
    %106 = vector.load %arg19[%c0_35, %c72] : memref<2x128xf32, #tpu.memory_space<vmem>>, vector<2x8xf32>
    tpu.vector_store %arg19[%c0_35, %c72], %105 {strides = array<i32>} : memref<2x128xf32, #tpu.memory_space<vmem>>, vector<2x8xf32>,
    %107 = vector.extract_strided_slice %33 {offsets = [0, 80], sizes = [2, 8], strides = [1, 1]} : vector<2x128xf32> to vector<2x8xf32>
    %108 = vector.extract_strided_slice %33 {offsets = [0, 88], sizes = [2, 8], strides = [1, 1]} : vector<2x128xf32> to vector<2x8xf32>
    %109 = vector.broadcast %34 : vector<1x8xf32> to vector<2x8xf32>
    %110 = arith.mulf %107, %109 : vector<2x8xf32>
    %111 = vector.broadcast %35 : vector<1x8xf32> to vector<2x8xf32>
    %112 = arith.mulf %108, %111 : vector<2x8xf32>
    %113 = arith.subf %110, %112 : vector<2x8xf32>
    %c0_36 = arith.constant 0 : index
    %c80 = arith.constant 80 : index
    %114 = vector.load %arg19[%c0_36, %c80] : memref<2x128xf32, #tpu.memory_space<vmem>>, vector<2x8xf32>
    tpu.vector_store %arg19[%c0_36, %c80], %113 {strides = array<i32>} : memref<2x128xf32, #tpu.memory_space<vmem>>, vector<2x8xf32>,
    %115 = vector.broadcast %35 : vector<1x8xf32> to vector<2x8xf32>
    %116 = arith.mulf %107, %115 : vector<2x8xf32>
    %117 = vector.broadcast %34 : vector<1x8xf32> to vector<2x8xf32>
    %118 = arith.mulf %108, %117 : vector<2x8xf32>
    %119 = arith.addf %116, %118 : vector<2x8xf32>
    %c0_37 = arith.constant 0 : index
    %c88 = arith.constant 88 : index
    %120 = vector.load %arg19[%c0_37, %c88] : memref<2x128xf32, #tpu.memory_space<vmem>>, vector<2x8xf32>
    tpu.vector_store %arg19[%c0_37, %c88], %119 {strides = array<i32>} : memref<2x128xf32, #tpu.memory_space<vmem>>, vector<2x8xf32>,
    %c0_38 = arith.constant 0 : index
    %c0_39 = arith.constant 0 : index
    %121 = vector.load %arg19[%c0_38, %c0_39] : memref<2x128xf32, #tpu.memory_space<vmem>>, vector<2x128xf32>
    %c0_i32_40 = arith.constant 0 : i32
    %c0_i32_41 = arith.constant 0 : i32
    %c0_i32_42 = arith.constant 0 : i32
    %122 = tpu.memref_slice %arg13[%arg0, %c0_i32_41, %c0_i32_42] : memref<2x32x128xf32, #tpu.memory_space<any>> -> memref<1x32x128xf32, #tpu.memory_space<any>>
    %123 = tpu.memref_squeeze %122 : memref<1x32x128xf32, #tpu.memory_space<any>> -> memref<32x128xf32, #tpu.memory_space<any>>
    %124 = tpu.memref_slice %arg24[%c0_i32_40] : memref<4x!tpu.dma_semaphore, #tpu.memory_space<semaphore_mem>> -> memref<1x!tpu.dma_semaphore, #tpu.memory_space<semaphore_mem>>
    %125 = tpu.memref_squeeze %124 : memref<1x!tpu.dma_semaphore, #tpu.memory_space<semaphore_mem>> -> memref<!tpu.dma_semaphore, #tpu.memory_space<semaphore_mem>>
    tpu.wait_dma2 semaphore(%125 : memref<!tpu.dma_semaphore, #tpu.memory_space<semaphore_mem>>) src(%123 : memref<32x128xf32, #tpu.memory_space<any>>) dst(%arg22 : memref<32x128xf32, #tpu.memory_space<vmem>>)
    %c1_i32_43 = arith.constant 1 : i32
    %c0_i32_44 = arith.constant 0 : i32
    %c0_i32_45 = arith.constant 0 : i32
    %126 = tpu.memref_slice %arg14[%arg0, %c0_i32_44, %c0_i32_45] : memref<2x32x128xf32, #tpu.memory_space<any>> -> memref<1x32x128xf32, #tpu.memory_space<any>>
    %127 = tpu.memref_squeeze %126 : memref<1x32x128xf32, #tpu.memory_space<any>> -> memref<32x128xf32, #tpu.memory_space<any>>
    %128 = tpu.memref_slice %arg24[%c1_i32_43] : memref<4x!tpu.dma_semaphore, #tpu.memory_space<semaphore_mem>> -> memref<1x!tpu.dma_semaphore, #tpu.memory_space<semaphore_mem>>
    %129 = tpu.memref_squeeze %128 : memref<1x!tpu.dma_semaphore, #tpu.memory_space<semaphore_mem>> -> memref<!tpu.dma_semaphore, #tpu.memory_space<semaphore_mem>>
    tpu.wait_dma2 semaphore(%129 : memref<!tpu.dma_semaphore, #tpu.memory_space<semaphore_mem>>) src(%127 : memref<32x128xf32, #tpu.memory_space<any>>) dst(%arg23 : memref<32x128xf32, #tpu.memory_space<vmem>>)
    %130 = vector.extract_strided_slice %121 {offsets = [0, 64], sizes = [1, 32], strides = [1, 1]} : vector<2x128xf32> to vector<1x32xf32>
    %131 = arith.index_cast %0 : i32 to index
    %c0_46 = arith.constant 0 : index
    %132 = vector.load %arg22[%131, %c0_46] : memref<32x128xf32, #tpu.memory_space<vmem>>, vector<1x32xf32>
    tpu.vector_store %arg22[%131, %c0_46], %130 {strides = array<i32>} : memref<32x128xf32, #tpu.memory_space<vmem>>, vector<1x32xf32>,
    %133 = vector.extract_strided_slice %121 {offsets = [0, 96], sizes = [1, 32], strides = [1, 1]} : vector<2x128xf32> to vector<1x32xf32>
    %134 = arith.index_cast %0 : i32 to index
    %c0_47 = arith.constant 0 : index
    %135 = vector.load %arg23[%134, %c0_47] : memref<32x128xf32, #tpu.memory_space<vmem>>, vector<1x32xf32>
    tpu.vector_store %arg23[%134, %c0_47], %133 {strides = array<i32>} : memref<32x128xf32, #tpu.memory_space<vmem>>, vector<1x32xf32>,
    %136 = vector.extract_strided_slice %121 {offsets = [1, 64], sizes = [1, 32], strides = [1, 1]} : vector<2x128xf32> to vector<1x32xf32>
    %137 = arith.index_cast %0 : i32 to index
    %c32_48 = arith.constant 32 : index
    %138 = vector.load %arg22[%137, %c32_48] : memref<32x128xf32, #tpu.memory_space<vmem>>, vector<1x32xf32>
    tpu.vector_store %arg22[%137, %c32_48], %136 {strides = array<i32>} : memref<32x128xf32, #tpu.memory_space<vmem>>, vector<1x32xf32>,
    %139 = vector.extract_strided_slice %121 {offsets = [1, 96], sizes = [1, 32], strides = [1, 1]} : vector<2x128xf32> to vector<1x32xf32>
    %140 = arith.index_cast %0 : i32 to index
    %c32_49 = arith.constant 32 : index
    %141 = vector.load %arg23[%140, %c32_49] : memref<32x128xf32, #tpu.memory_space<vmem>>, vector<1x32xf32>
    tpu.vector_store %arg23[%140, %c32_49], %139 {strides = array<i32>} : memref<32x128xf32, #tpu.memory_space<vmem>>, vector<1x32xf32>,
    %c2_i32 = arith.constant 2 : i32
    %c0_i32_50 = arith.constant 0 : i32
    %142 = tpu.memref_slice %arg22[%0, %c0_i32_50] : memref<32x128xf32, #tpu.memory_space<vmem>> -> memref<1x128xf32, #tpu.memory_space<vmem>>
    %c0_i32_51 = arith.constant 0 : i32
    %143 = tpu.memref_slice %arg16[%arg0, %0, %c0_i32_51] : memref<2x32x128xf32, #tpu.memory_space<any>> -> memref<1x1x128xf32, #tpu.memory_space<any>>
    %144 = tpu.memref_squeeze %143 : memref<1x1x128xf32, #tpu.memory_space<any>> -> memref<1x128xf32, #tpu.memory_space<any>>
    %145 = tpu.memref_slice %arg24[%c2_i32] : memref<4x!tpu.dma_semaphore, #tpu.memory_space<semaphore_mem>> -> memref<1x!tpu.dma_semaphore, #tpu.memory_space<semaphore_mem>>
    %146 = tpu.memref_squeeze %145 : memref<1x!tpu.dma_semaphore, #tpu.memory_space<semaphore_mem>> -> memref<!tpu.dma_semaphore, #tpu.memory_space<semaphore_mem>>
    tpu.enqueue_dma source(%142 : memref<1x128xf32, #tpu.memory_space<vmem>>) target(%144 : memref<1x128xf32, #tpu.memory_space<any>>) target_semaphore(%146 : memref<!tpu.dma_semaphore, #tpu.memory_space<semaphore_mem>>)
    %c3_i32 = arith.constant 3 : i32
    %c0_i32_52 = arith.constant 0 : i32
    %147 = tpu.memref_slice %arg23[%0, %c0_i32_52] : memref<32x128xf32, #tpu.memory_space<vmem>> -> memref<1x128xf32, #tpu.memory_space<vmem>>
    %c0_i32_53 = arith.constant 0 : i32
    %148 = tpu.memref_slice %arg17[%arg0, %0, %c0_i32_53] : memref<2x32x128xf32, #tpu.memory_space<any>> -> memref<1x1x128xf32, #tpu.memory_space<any>>
    %149 = tpu.memref_squeeze %148 : memref<1x1x128xf32, #tpu.memory_space<any>> -> memref<1x128xf32, #tpu.memory_space<any>>
    %150 = tpu.memref_slice %arg24[%c3_i32] : memref<4x!tpu.dma_semaphore, #tpu.memory_space<semaphore_mem>> -> memref<1x!tpu.dma_semaphore, #tpu.memory_space<semaphore_mem>>
    %151 = tpu.memref_squeeze %150 : memref<1x!tpu.dma_semaphore, #tpu.memory_space<semaphore_mem>> -> memref<!tpu.dma_semaphore, #tpu.memory_space<semaphore_mem>>
    tpu.enqueue_dma source(%147 : memref<1x128xf32, #tpu.memory_space<vmem>>) target(%149 : memref<1x128xf32, #tpu.memory_space<any>>) target_semaphore(%151 : memref<!tpu.dma_semaphore, #tpu.memory_space<semaphore_mem>>)
    %152 = vector.extract_strided_slice %121 {offsets = [0, 0], sizes = [1, 16], strides = [1, 1]} : vector<2x128xf32> to vector<1x16xf32>
    %c0_54 = arith.constant 0 : index
    %c0_55 = arith.constant 0 : index
    %153 = vector.load %arg20[%c0_54, %c0_55] : memref<8x16xf32, #tpu.memory_space<vmem>>, vector<1x16xf32>
    tpu.vector_store %arg20[%c0_54, %c0_55], %152 {strides = array<i32>} : memref<8x16xf32, #tpu.memory_space<vmem>>, vector<1x16xf32>,
    %154 = vector.extract_strided_slice %121 {offsets = [0, 16], sizes = [1, 16], strides = [1, 1]} : vector<2x128xf32> to vector<1x16xf32>
    %c1_56 = arith.constant 1 : index
    %c0_57 = arith.constant 0 : index
    %155 = vector.load %arg20[%c1_56, %c0_57] : memref<8x16xf32, #tpu.memory_space<vmem>>, vector<1x16xf32>
    tpu.vector_store %arg20[%c1_56, %c0_57], %154 {strides = array<i32>} : memref<8x16xf32, #tpu.memory_space<vmem>>, vector<1x16xf32>,
    %156 = vector.extract_strided_slice %121 {offsets = [0, 32], sizes = [1, 16], strides = [1, 1]} : vector<2x128xf32> to vector<1x16xf32>
    %c2 = arith.constant 2 : index
    %c0_58 = arith.constant 0 : index
    %157 = vector.load %arg20[%c2, %c0_58] : memref<8x16xf32, #tpu.memory_space<vmem>>, vector<1x16xf32>
    tpu.vector_store %arg20[%c2, %c0_58], %156 {strides = array<i32>} : memref<8x16xf32, #tpu.memory_space<vmem>>, vector<1x16xf32>,
    %158 = vector.extract_strided_slice %121 {offsets = [0, 48], sizes = [1, 16], strides = [1, 1]} : vector<2x128xf32> to vector<1x16xf32>
    %c3 = arith.constant 3 : index
    %c0_59 = arith.constant 0 : index
    %159 = vector.load %arg20[%c3, %c0_59] : memref<8x16xf32, #tpu.memory_space<vmem>>, vector<1x16xf32>
    tpu.vector_store %arg20[%c3, %c0_59], %158 {strides = array<i32>} : memref<8x16xf32, #tpu.memory_space<vmem>>, vector<1x16xf32>,
    %160 = vector.extract_strided_slice %121 {offsets = [1, 0], sizes = [1, 16], strides = [1, 1]} : vector<2x128xf32> to vector<1x16xf32>
    %c4 = arith.constant 4 : index
    %c0_60 = arith.constant 0 : index
    %161 = vector.load %arg20[%c4, %c0_60] : memref<8x16xf32, #tpu.memory_space<vmem>>, vector<1x16xf32>
    tpu.vector_store %arg20[%c4, %c0_60], %160 {strides = array<i32>} : memref<8x16xf32, #tpu.memory_space<vmem>>, vector<1x16xf32>,
    %162 = vector.extract_strided_slice %121 {offsets = [1, 16], sizes = [1, 16], strides = [1, 1]} : vector<2x128xf32> to vector<1x16xf32>
    %c5 = arith.constant 5 : index
    %c0_61 = arith.constant 0 : index
    %163 = vector.load %arg20[%c5, %c0_61] : memref<8x16xf32, #tpu.memory_space<vmem>>, vector<1x16xf32>
    tpu.vector_store %arg20[%c5, %c0_61], %162 {strides = array<i32>} : memref<8x16xf32, #tpu.memory_space<vmem>>, vector<1x16xf32>,
    %164 = vector.extract_strided_slice %121 {offsets = [1, 32], sizes = [1, 16], strides = [1, 1]} : vector<2x128xf32> to vector<1x16xf32>
    %c6 = arith.constant 6 : index
    %c0_62 = arith.constant 0 : index
    %165 = vector.load %arg20[%c6, %c0_62] : memref<8x16xf32, #tpu.memory_space<vmem>>, vector<1x16xf32>
    tpu.vector_store %arg20[%c6, %c0_62], %164 {strides = array<i32>} : memref<8x16xf32, #tpu.memory_space<vmem>>, vector<1x16xf32>,
    %166 = vector.extract_strided_slice %121 {offsets = [1, 48], sizes = [1, 16], strides = [1, 1]} : vector<2x128xf32> to vector<1x16xf32>
    %c7 = arith.constant 7 : index
    %c0_63 = arith.constant 0 : index
    %167 = vector.load %arg20[%c7, %c0_63] : memref<8x16xf32, #tpu.memory_space<vmem>>, vector<1x16xf32>
    tpu.vector_store %arg20[%c7, %c0_63], %166 {strides = array<i32>} : memref<8x16xf32, #tpu.memory_space<vmem>>, vector<1x16xf32>,
    %c0_64 = arith.constant 0 : index
    %c0_65 = arith.constant 0 : index
    %168 = vector.load %arg20[%c0_64, %c0_65] : memref<8x16xf32, #tpu.memory_space<vmem>>, vector<8x16xf32>
    %169 = tpu.iota {dimensions = array<i32: 1>} : vector<1x32xi32>
    %170 = vector.broadcast %0 : i32 to vector<1x32xi32>
    %171 = arith.cmpi sle, %169, %170 : vector<1x32xi32>
    %c0_66 = arith.constant 0 : index
    %c0_67 = arith.constant 0 : index
    %172 = vector.load %arg22[%c0_66, %c0_67] : memref<32x128xf32, #tpu.memory_space<vmem>>, vector<32x16xf32>
    %c0_68 = arith.constant 0 : index
    %c0_69 = arith.constant 0 : index
    %173 = vector.load %arg23[%c0_68, %c0_69] : memref<32x128xf32, #tpu.memory_space<vmem>>, vector<32x16xf32>
    %174 = vector.extract_strided_slice %168 {offsets = [0, 0], sizes = [2, 16], strides = [1, 1]} : vector<8x16xf32> to vector<2x16xf32>
    %cst_70 = arith.constant dense<0.000000e+00> : vector<2x32xf32>
    %175 = tpu.matmul %174, %172, %cst_70 {dimension_numbers = #tpu.dot_dimension_numbers<[1], [1], [0], [0], [0, 0, 1, 0], [], []>} : vector<2x16xf32>, vector<32x16xf32>, vector<2x32xf32> -> vector<2x32xf32>
    %cst_71 = arith.constant 2.500000e-01 : f32
    %176 = vector.broadcast %cst_71 : f32 to vector<2x32xf32>
    %177 = arith.mulf %175, %176 : vector<2x32xf32>
    %cst_72 = arith.constant -1.000000e+30 : f32
    %178 = vector.shape_cast %171 : vector<1x32xi1> to vector<1x32xi1>
    %179 = vector.broadcast %178 : vector<1x32xi1> to vector<2x32xi1>
    %180 = vector.broadcast %cst_72 : f32 to vector<2x32xf32>
    %181 = arith.select %179, %177, %180 : vector<2x32xi1>, vector<2x32xf32>
    %cst_73 = arith.constant dense<0xFF800000> : vector<2xf32>
    %182 = vector.multi_reduction <maximumf>, %181, %cst_73 [1] : vector<2x32xf32> to vector<2xf32>
    %183 = vector.shape_cast %182 : vector<2xf32> to vector<2x1xf32>
    %184 = vector.broadcast %183 : vector<2x1xf32> to vector<2x32xf32>
    %185 = arith.subf %181, %184 : vector<2x32xf32>
    %186 = math.exp %185 : vector<2x32xf32>
    %cst_74 = arith.constant dense<0.000000e+00> : vector<2xf32>
    %187 = vector.multi_reduction <add>, %186, %cst_74 [1] : vector<2x32xf32> to vector<2xf32>
    %188 = vector.shape_cast %187 : vector<2xf32> to vector<2x1xf32>
    %189 = vector.broadcast %188 : vector<2x1xf32> to vector<2x32xf32>
    %190 = arith.divf %186, %189 : vector<2x32xf32>
    %cst_75 = arith.constant dense<0.000000e+00> : vector<2x16xf32>
    %191 = tpu.matmul %190, %173, %cst_75 {dimension_numbers = #tpu.dot_dimension_numbers<[1], [0], [0], [1], [0, 0, 1, 1], [], []>} : vector<2x32xf32>, vector<32x16xf32>, vector<2x16xf32> -> vector<2x16xf32>
    %192 = vector.extract_strided_slice %191 {offsets = [0, 0], sizes = [1, 16], strides = [1, 1]} : vector<2x16xf32> to vector<1x16xf32>
    %c0_76 = arith.constant 0 : index
    %c0_77 = arith.constant 0 : index
    %193 = vector.load %arg21[%c0_76, %c0_77] : memref<2x64xf32, #tpu.memory_space<vmem>>, vector<1x16xf32>
    tpu.vector_store %arg21[%c0_76, %c0_77], %192 {strides = array<i32>} : memref<2x64xf32, #tpu.memory_space<vmem>>, vector<1x16xf32>,
    %194 = vector.extract_strided_slice %191 {offsets = [1, 0], sizes = [1, 16], strides = [1, 1]} : vector<2x16xf32> to vector<1x16xf32>
    %c0_78 = arith.constant 0 : index
    %c16_79 = arith.constant 16 : index
    %195 = vector.load %arg21[%c0_78, %c16_79] : memref<2x64xf32, #tpu.memory_space<vmem>>, vector<1x16xf32>
    tpu.vector_store %arg21[%c0_78, %c16_79], %194 {strides = array<i32>} : memref<2x64xf32, #tpu.memory_space<vmem>>, vector<1x16xf32>,
    %c0_80 = arith.constant 0 : index
    %c16_81 = arith.constant 16 : index
    %196 = vector.load %arg22[%c0_80, %c16_81] : memref<32x128xf32, #tpu.memory_space<vmem>>, vector<32x16xf32>
    %c0_82 = arith.constant 0 : index
    %c16_83 = arith.constant 16 : index
    %197 = vector.load %arg23[%c0_82, %c16_83] : memref<32x128xf32, #tpu.memory_space<vmem>>, vector<32x16xf32>
    %198 = vector.extract_strided_slice %168 {offsets = [2, 0], sizes = [2, 16], strides = [1, 1]} : vector<8x16xf32> to vector<2x16xf32>
    %cst_84 = arith.constant dense<0.000000e+00> : vector<2x32xf32>
    %199 = tpu.matmul %198, %196, %cst_84 {dimension_numbers = #tpu.dot_dimension_numbers<[1], [1], [0], [0], [0, 0, 1, 0], [], []>} : vector<2x16xf32>, vector<32x16xf32>, vector<2x32xf32> -> vector<2x32xf32>
    %cst_85 = arith.constant 2.500000e-01 : f32
    %200 = vector.broadcast %cst_85 : f32 to vector<2x32xf32>
    %201 = arith.mulf %199, %200 : vector<2x32xf32>
    %cst_86 = arith.constant -1.000000e+30 : f32
    %202 = vector.shape_cast %171 : vector<1x32xi1> to vector<1x32xi1>
    %203 = vector.broadcast %202 : vector<1x32xi1> to vector<2x32xi1>
    %204 = vector.broadcast %cst_86 : f32 to vector<2x32xf32>
    %205 = arith.select %203, %201, %204 : vector<2x32xi1>, vector<2x32xf32>
    %cst_87 = arith.constant dense<0xFF800000> : vector<2xf32>
    %206 = vector.multi_reduction <maximumf>, %205, %cst_87 [1] : vector<2x32xf32> to vector<2xf32>
    %207 = vector.shape_cast %206 : vector<2xf32> to vector<2x1xf32>
    %208 = vector.broadcast %207 : vector<2x1xf32> to vector<2x32xf32>
    %209 = arith.subf %205, %208 : vector<2x32xf32>
    %210 = math.exp %209 : vector<2x32xf32>
    %cst_88 = arith.constant dense<0.000000e+00> : vector<2xf32>
    %211 = vector.multi_reduction <add>, %210, %cst_88 [1] : vector<2x32xf32> to vector<2xf32>
    %212 = vector.shape_cast %211 : vector<2xf32> to vector<2x1xf32>
    %213 = vector.broadcast %212 : vector<2x1xf32> to vector<2x32xf32>
    %214 = arith.divf %210, %213 : vector<2x32xf32>
    %cst_89 = arith.constant dense<0.000000e+00> : vector<2x16xf32>
    %215 = tpu.matmul %214, %197, %cst_89 {dimension_numbers = #tpu.dot_dimension_numbers<[1], [0], [0], [1], [0, 0, 1, 1], [], []>} : vector<2x32xf32>, vector<32x16xf32>, vector<2x16xf32> -> vector<2x16xf32>
    %216 = vector.extract_strided_slice %215 {offsets = [0, 0], sizes = [1, 16], strides = [1, 1]} : vector<2x16xf32> to vector<1x16xf32>
    %c0_90 = arith.constant 0 : index
    %c32_91 = arith.constant 32 : index
    %217 = vector.load %arg21[%c0_90, %c32_91] : memref<2x64xf32, #tpu.memory_space<vmem>>, vector<1x16xf32>
    tpu.vector_store %arg21[%c0_90, %c32_91], %216 {strides = array<i32>} : memref<2x64xf32, #tpu.memory_space<vmem>>, vector<1x16xf32>,
    %218 = vector.extract_strided_slice %215 {offsets = [1, 0], sizes = [1, 16], strides = [1, 1]} : vector<2x16xf32> to vector<1x16xf32>
    %c0_92 = arith.constant 0 : index
    %c48_93 = arith.constant 48 : index
    %219 = vector.load %arg21[%c0_92, %c48_93] : memref<2x64xf32, #tpu.memory_space<vmem>>, vector<1x16xf32>
    tpu.vector_store %arg21[%c0_92, %c48_93], %218 {strides = array<i32>} : memref<2x64xf32, #tpu.memory_space<vmem>>, vector<1x16xf32>,
    %c0_94 = arith.constant 0 : index
    %c32_95 = arith.constant 32 : index
    %220 = vector.load %arg22[%c0_94, %c32_95] : memref<32x128xf32, #tpu.memory_space<vmem>>, vector<32x16xf32>
    %c0_96 = arith.constant 0 : index
    %c32_97 = arith.constant 32 : index
    %221 = vector.load %arg23[%c0_96, %c32_97] : memref<32x128xf32, #tpu.memory_space<vmem>>, vector<32x16xf32>
    %222 = vector.extract_strided_slice %168 {offsets = [4, 0], sizes = [2, 16], strides = [1, 1]} : vector<8x16xf32> to vector<2x16xf32>
    %cst_98 = arith.constant dense<0.000000e+00> : vector<2x32xf32>
    %223 = tpu.matmul %222, %220, %cst_98 {dimension_numbers = #tpu.dot_dimension_numbers<[1], [1], [0], [0], [0, 0, 1, 0], [], []>} : vector<2x16xf32>, vector<32x16xf32>, vector<2x32xf32> -> vector<2x32xf32>
    %cst_99 = arith.constant 2.500000e-01 : f32
    %224 = vector.broadcast %cst_99 : f32 to vector<2x32xf32>
    %225 = arith.mulf %223, %224 : vector<2x32xf32>
    %cst_100 = arith.constant -1.000000e+30 : f32
    %226 = vector.shape_cast %171 : vector<1x32xi1> to vector<1x32xi1>
    %227 = vector.broadcast %226 : vector<1x32xi1> to vector<2x32xi1>
    %228 = vector.broadcast %cst_100 : f32 to vector<2x32xf32>
    %229 = arith.select %227, %225, %228 : vector<2x32xi1>, vector<2x32xf32>
    %cst_101 = arith.constant dense<0xFF800000> : vector<2xf32>
    %230 = vector.multi_reduction <maximumf>, %229, %cst_101 [1] : vector<2x32xf32> to vector<2xf32>
    %231 = vector.shape_cast %230 : vector<2xf32> to vector<2x1xf32>
    %232 = vector.broadcast %231 : vector<2x1xf32> to vector<2x32xf32>
    %233 = arith.subf %229, %232 : vector<2x32xf32>
    %234 = math.exp %233 : vector<2x32xf32>
    %cst_102 = arith.constant dense<0.000000e+00> : vector<2xf32>
    %235 = vector.multi_reduction <add>, %234, %cst_102 [1] : vector<2x32xf32> to vector<2xf32>
    %236 = vector.shape_cast %235 : vector<2xf32> to vector<2x1xf32>
    %237 = vector.broadcast %236 : vector<2x1xf32> to vector<2x32xf32>
    %238 = arith.divf %234, %237 : vector<2x32xf32>
    %cst_103 = arith.constant dense<0.000000e+00> : vector<2x16xf32>
    %239 = tpu.matmul %238, %221, %cst_103 {dimension_numbers = #tpu.dot_dimension_numbers<[1], [0], [0], [1], [0, 0, 1, 1], [], []>} : vector<2x32xf32>, vector<32x16xf32>, vector<2x16xf32> -> vector<2x16xf32>
    %240 = vector.extract_strided_slice %239 {offsets = [0, 0], sizes = [1, 16], strides = [1, 1]} : vector<2x16xf32> to vector<1x16xf32>
    %c1_104 = arith.constant 1 : index
    %c0_105 = arith.constant 0 : index
    %241 = vector.load %arg21[%c1_104, %c0_105] : memref<2x64xf32, #tpu.memory_space<vmem>>, vector<1x16xf32>
    tpu.vector_store %arg21[%c1_104, %c0_105], %240 {strides = array<i32>} : memref<2x64xf32, #tpu.memory_space<vmem>>, vector<1x16xf32>,
    %242 = vector.extract_strided_slice %239 {offsets = [1, 0], sizes = [1, 16], strides = [1, 1]} : vector<2x16xf32> to vector<1x16xf32>
    %c1_106 = arith.constant 1 : index
    %c16_107 = arith.constant 16 : index
    %243 = vector.load %arg21[%c1_106, %c16_107] : memref<2x64xf32, #tpu.memory_space<vmem>>, vector<1x16xf32>
    tpu.vector_store %arg21[%c1_106, %c16_107], %242 {strides = array<i32>} : memref<2x64xf32, #tpu.memory_space<vmem>>, vector<1x16xf32>,
    %c0_108 = arith.constant 0 : index
    %c48_109 = arith.constant 48 : index
    %244 = vector.load %arg22[%c0_108, %c48_109] : memref<32x128xf32, #tpu.memory_space<vmem>>, vector<32x16xf32>
    %c0_110 = arith.constant 0 : index
    %c48_111 = arith.constant 48 : index
    %245 = vector.load %arg23[%c0_110, %c48_111] : memref<32x128xf32, #tpu.memory_space<vmem>>, vector<32x16xf32>
    %246 = vector.extract_strided_slice %168 {offsets = [6, 0], sizes = [2, 16], strides = [1, 1]} : vector<8x16xf32> to vector<2x16xf32>
    %cst_112 = arith.constant dense<0.000000e+00> : vector<2x32xf32>
    %247 = tpu.matmul %246, %244, %cst_112 {dimension_numbers = #tpu.dot_dimension_numbers<[1], [1], [0], [0], [0, 0, 1, 0], [], []>} : vector<2x16xf32>, vector<32x16xf32>, vector<2x32xf32> -> vector<2x32xf32>
    %cst_113 = arith.constant 2.500000e-01 : f32
    %248 = vector.broadcast %cst_113 : f32 to vector<2x32xf32>
    %249 = arith.mulf %247, %248 : vector<2x32xf32>
    %cst_114 = arith.constant -1.000000e+30 : f32
    %250 = vector.shape_cast %171 : vector<1x32xi1> to vector<1x32xi1>
    %251 = vector.broadcast %250 : vector<1x32xi1> to vector<2x32xi1>
    %252 = vector.broadcast %cst_114 : f32 to vector<2x32xf32>
    %253 = arith.select %251, %249, %252 : vector<2x32xi1>, vector<2x32xf32>
    %cst_115 = arith.constant dense<0xFF800000> : vector<2xf32>
    %254 = vector.multi_reduction <maximumf>, %253, %cst_115 [1] : vector<2x32xf32> to vector<2xf32>
    %255 = vector.shape_cast %254 : vector<2xf32> to vector<2x1xf32>
    %256 = vector.broadcast %255 : vector<2x1xf32> to vector<2x32xf32>
    %257 = arith.subf %253, %256 : vector<2x32xf32>
    %258 = math.exp %257 : vector<2x32xf32>
    %cst_116 = arith.constant dense<0.000000e+00> : vector<2xf32>
    %259 = vector.multi_reduction <add>, %258, %cst_116 [1] : vector<2x32xf32> to vector<2xf32>
    %260 = vector.shape_cast %259 : vector<2xf32> to vector<2x1xf32>
    %261 = vector.broadcast %260 : vector<2x1xf32> to vector<2x32xf32>
    %262 = arith.divf %258, %261 : vector<2x32xf32>
    %cst_117 = arith.constant dense<0.000000e+00> : vector<2x16xf32>
    %263 = tpu.matmul %262, %245, %cst_117 {dimension_numbers = #tpu.dot_dimension_numbers<[1], [0], [0], [1], [0, 0, 1, 1], [], []>} : vector<2x32xf32>, vector<32x16xf32>, vector<2x16xf32> -> vector<2x16xf32>
    %264 = vector.extract_strided_slice %263 {offsets = [0, 0], sizes = [1, 16], strides = [1, 1]} : vector<2x16xf32> to vector<1x16xf32>
    %c1_118 = arith.constant 1 : index
    %c32_119 = arith.constant 32 : index
    %265 = vector.load %arg21[%c1_118, %c32_119] : memref<2x64xf32, #tpu.memory_space<vmem>>, vector<1x16xf32>
    tpu.vector_store %arg21[%c1_118, %c32_119], %264 {strides = array<i32>} : memref<2x64xf32, #tpu.memory_space<vmem>>, vector<1x16xf32>,
    %266 = vector.extract_strided_slice %263 {offsets = [1, 0], sizes = [1, 16], strides = [1, 1]} : vector<2x16xf32> to vector<1x16xf32>
    %c1_120 = arith.constant 1 : index
    %c48_121 = arith.constant 48 : index
    %267 = vector.load %arg21[%c1_120, %c48_121] : memref<2x64xf32, #tpu.memory_space<vmem>>, vector<1x16xf32>
    tpu.vector_store %arg21[%c1_120, %c48_121], %266 {strides = array<i32>} : memref<2x64xf32, #tpu.memory_space<vmem>>, vector<1x16xf32>,
    %c0_122 = arith.constant 0 : index
    %c0_123 = arith.constant 0 : index
    %268 = vector.load %arg21[%c0_122, %c0_123] : memref<2x64xf32, #tpu.memory_space<vmem>>, vector<2x64xf32>
    %c0_124 = arith.constant 0 : index
    %c0_125 = arith.constant 0 : index
    %c0_126 = arith.constant 0 : index
    %269 = vector.load %arg7[%c0_124, %c0_125, %c0_126] : memref<1x64x64xf32, #tpu.memory_space<vmem>>, vector<1x64x64xf32>
    %270 = vector.shape_cast %269 : vector<1x64x64xf32> to vector<64x64xf32>
    %cst_127 = arith.constant dense<0.000000e+00> : vector<2x64xf32>
    %271 = tpu.matmul %268, %270, %cst_127 {dimension_numbers = #tpu.dot_dimension_numbers<[1], [0], [0], [1], [0, 0, 1, 1], [], []>} : vector<2x64xf32>, vector<64x64xf32>, vector<2x64xf32> -> vector<2x64xf32>
    %272 = arith.addf %12, %271 : vector<2x64xf32>
    %273 = arith.mulf %272, %272 : vector<2x64xf32>
    %cst_128 = arith.constant dense<0.000000e+00> : vector<2xf32>
    %274 = vector.multi_reduction <add>, %273, %cst_128 [1] : vector<2x64xf32> to vector<2xf32>
    %275 = vector.shape_cast %274 : vector<2xf32> to vector<2x1xf32>
    %cst_129 = arith.constant 6.400000e+01 : f32
    %276 = vector.broadcast %cst_129 : f32 to vector<2x1xf32>
    %277 = arith.divf %275, %276 : vector<2x1xf32>
    %cst_130 = arith.constant 9.99999997E-7 : f32
    %278 = vector.broadcast %cst_130 : f32 to vector<2x1xf32>
    %279 = arith.addf %277, %278 : vector<2x1xf32>
    %280 = math.rsqrt %279 : vector<2x1xf32>
    %281 = vector.broadcast %280 : vector<2x1xf32> to vector<2x64xf32>
    %282 = arith.mulf %272, %281 : vector<2x64xf32>
    %c0_131 = arith.constant 0 : index
    %c0_132 = arith.constant 0 : index
    %c0_133 = arith.constant 0 : index
    %283 = vector.load %arg8[%c0_131, %c0_132, %c0_133] : memref<1x1x64xf32, #tpu.memory_space<vmem>>, vector<1x1x64xf32>
    %284 = vector.shape_cast %283 : vector<1x1x64xf32> to vector<1x64xf32>
    %285 = vector.broadcast %284 : vector<1x64xf32> to vector<2x64xf32>
    %286 = arith.mulf %282, %285 : vector<2x64xf32>
    %c0_134 = arith.constant 0 : index
    %c0_135 = arith.constant 0 : index
    %c0_136 = arith.constant 0 : index
    %287 = vector.load %arg9[%c0_134, %c0_135, %c0_136] : memref<1x64x256xf32, #tpu.memory_space<vmem>>, vector<1x64x256xf32>
    %288 = vector.shape_cast %287 : vector<1x64x256xf32> to vector<64x256xf32>
    %cst_137 = arith.constant dense<0.000000e+00> : vector<2x256xf32>
    %289 = tpu.matmul %286, %288, %cst_137 {dimension_numbers = #tpu.dot_dimension_numbers<[1], [0], [0], [1], [0, 0, 1, 1], [], []>} : vector<2x64xf32>, vector<64x256xf32>, vector<2x256xf32> -> vector<2x256xf32>
    %290 = vector.extract_strided_slice %289 {offsets = [0, 0], sizes = [2, 128], strides = [1, 1]} : vector<2x256xf32> to vector<2x128xf32>
    %291 = vector.extract_strided_slice %289 {offsets = [0, 128], sizes = [2, 128], strides = [1, 1]} : vector<2x256xf32> to vector<2x128xf32>
    %292 = arith.negf %290 : vector<2x128xf32>
    %293 = math.exp %292 : vector<2x128xf32>
    %cst_138 = arith.constant 1.000000e+00 : f32
    %294 = vector.broadcast %cst_138 : f32 to vector<2x128xf32>
    %295 = arith.addf %294, %293 : vector<2x128xf32>
    %296 = arith.divf %294, %295 : vector<2x128xf32>
    %297 = arith.mulf %290, %296 : vector<2x128xf32>
    %298 = arith.mulf %297, %291 : vector<2x128xf32>
    %c0_139 = arith.constant 0 : index
    %c0_140 = arith.constant 0 : index
    %c0_141 = arith.constant 0 : index
    %299 = vector.load %arg10[%c0_139, %c0_140, %c0_141] : memref<1x128x64xf32, #tpu.memory_space<vmem>>, vector<1x128x64xf32>
    %300 = vector.shape_cast %299 : vector<1x128x64xf32> to vector<128x64xf32>
    %cst_142 = arith.constant dense<0.000000e+00> : vector<2x64xf32>
    %301 = tpu.matmul %298, %300, %cst_142 {dimension_numbers = #tpu.dot_dimension_numbers<[1], [0], [0], [1], [0, 0, 1, 1], [], []>} : vector<2x128xf32>, vector<128x64xf32>, vector<2x64xf32> -> vector<2x64xf32>
    %302 = arith.addf %272, %301 : vector<2x64xf32>
    %c0_143 = arith.constant 0 : index
    %c0_144 = arith.constant 0 : index
    %303 = vector.load %arg18[%c0_143, %c0_144] : memref<2x64xf32, #tpu.memory_space<vmem>>, vector<2x64xf32>
    tpu.vector_store %arg18[%c0_143, %c0_144], %302 {strides = array<i32>} : memref<2x64xf32, #tpu.memory_space<vmem>>, vector<2x64xf32>,
    %c1_i32_145 = arith.constant 1 : i32
    %304 = arith.cmpi eq, %arg0, %c1_i32_145 : i32
    %305 = arith.extui %304 : i1 to i32
    %c0_i32_146 = arith.constant 0 : i32
    %306 = arith.cmpi ne, %305, %c0_i32_146 : i32
    scf.if %306 {
      %317 = arith.mulf %302, %302 : vector<2x64xf32>
      %cst_153 = arith.constant dense<0.000000e+00> : vector<2xf32>
      %318 = vector.multi_reduction <add>, %317, %cst_153 [1] : vector<2x64xf32> to vector<2xf32>
      %319 = vector.shape_cast %318 : vector<2xf32> to vector<2x1xf32>
      %cst_154 = arith.constant 6.400000e+01 : f32
      %320 = vector.broadcast %cst_154 : f32 to vector<2x1xf32>
      %321 = arith.divf %319, %320 : vector<2x1xf32>
      %cst_155 = arith.constant 9.99999997E-7 : f32
      %322 = vector.broadcast %cst_155 : f32 to vector<2x1xf32>
      %323 = arith.addf %321, %322 : vector<2x1xf32>
      %324 = math.rsqrt %323 : vector<2x1xf32>
      %325 = vector.broadcast %324 : vector<2x1xf32> to vector<2x64xf32>
      %326 = arith.mulf %302, %325 : vector<2x64xf32>
      %c0_156 = arith.constant 0 : index
      %c0_157 = arith.constant 0 : index
      %327 = vector.load %arg11[%c0_156, %c0_157] : memref<1x64xf32, #tpu.memory_space<vmem>>, vector<1x64xf32>
      %328 = vector.broadcast %327 : vector<1x64xf32> to vector<2x64xf32>
      %329 = arith.mulf %326, %328 : vector<2x64xf32>
      %c0_158 = arith.constant 0 : index
      %c0_159 = arith.constant 0 : index
      %330 = vector.load %arg12[%c0_158, %c0_159] : memref<64x256xf32, #tpu.memory_space<vmem>>, vector<64x256xf32>
      %cst_160 = arith.constant dense<0.000000e+00> : vector<2x256xf32>
      %331 = tpu.matmul %329, %330, %cst_160 {dimension_numbers = #tpu.dot_dimension_numbers<[1], [0], [0], [1], [0, 0, 1, 1], [], []>} : vector<2x64xf32>, vector<64x256xf32>, vector<2x256xf32> -> vector<2x256xf32>
      %c0_161 = arith.constant 0 : index
      %c0_162 = arith.constant 0 : index
      %332 = vector.load %arg15[%c0_161, %c0_162] : memref<2x256xf32, #tpu.memory_space<vmem>>, vector<2x256xf32>
      tpu.vector_store %arg15[%c0_161, %c0_162], %331 {strides = array<i32>} : memref<2x256xf32, #tpu.memory_space<vmem>>, vector<2x256xf32>,
    } else {
    }
    %c2_i32_147 = arith.constant 2 : i32
    %c0_i32_148 = arith.constant 0 : i32
    %307 = tpu.memref_slice %arg22[%0, %c0_i32_148] : memref<32x128xf32, #tpu.memory_space<vmem>> -> memref<1x128xf32, #tpu.memory_space<vmem>>
    %c0_i32_149 = arith.constant 0 : i32
    %308 = tpu.memref_slice %arg16[%arg0, %0, %c0_i32_149] : memref<2x32x128xf32, #tpu.memory_space<any>> -> memref<1x1x128xf32, #tpu.memory_space<any>>
    %309 = tpu.memref_squeeze %308 : memref<1x1x128xf32, #tpu.memory_space<any>> -> memref<1x128xf32, #tpu.memory_space<any>>
    %310 = tpu.memref_slice %arg24[%c2_i32_147] : memref<4x!tpu.dma_semaphore, #tpu.memory_space<semaphore_mem>> -> memref<1x!tpu.dma_semaphore, #tpu.memory_space<semaphore_mem>>
    %311 = tpu.memref_squeeze %310 : memref<1x!tpu.dma_semaphore, #tpu.memory_space<semaphore_mem>> -> memref<!tpu.dma_semaphore, #tpu.memory_space<semaphore_mem>>
    tpu.wait_dma2 semaphore(%311 : memref<!tpu.dma_semaphore, #tpu.memory_space<semaphore_mem>>) src(%307 : memref<1x128xf32, #tpu.memory_space<vmem>>) dst(%309 : memref<1x128xf32, #tpu.memory_space<any>>)
    %c3_i32_150 = arith.constant 3 : i32
    %c0_i32_151 = arith.constant 0 : i32
    %312 = tpu.memref_slice %arg23[%0, %c0_i32_151] : memref<32x128xf32, #tpu.memory_space<vmem>> -> memref<1x128xf32, #tpu.memory_space<vmem>>
    %c0_i32_152 = arith.constant 0 : i32
    %313 = tpu.memref_slice %arg17[%arg0, %0, %c0_i32_152] : memref<2x32x128xf32, #tpu.memory_space<any>> -> memref<1x1x128xf32, #tpu.memory_space<any>>
    %314 = tpu.memref_squeeze %313 : memref<1x1x128xf32, #tpu.memory_space<any>> -> memref<1x128xf32, #tpu.memory_space<any>>
    %315 = tpu.memref_slice %arg24[%c3_i32_150] : memref<4x!tpu.dma_semaphore, #tpu.memory_space<semaphore_mem>> -> memref<1x!tpu.dma_semaphore, #tpu.memory_space<semaphore_mem>>
    %316 = tpu.memref_squeeze %315 : memref<1x!tpu.dma_semaphore, #tpu.memory_space<semaphore_mem>> -> memref<!tpu.dma_semaphore, #tpu.memory_space<semaphore_mem>>
    tpu.wait_dma2 semaphore(%316 : memref<!tpu.dma_semaphore, #tpu.memory_space<semaphore_mem>>) src(%312 : memref<1x128xf32, #tpu.memory_space<vmem>>) dst(%314 : memref<1x128xf32, #tpu.memory_space<any>>)
    return
  }
  func.func @transform_0(%arg0: i32) -> i32 {
    %c0_i32 = arith.constant 0 : i32
    %c0_i32_0 = arith.constant 0 : i32
    return %c0_i32 : i32
  }
  func.func @transform_1(%arg0: i32) -> (i32, i32) {
    %c0_i32 = arith.constant 0 : i32
    %c0_i32_0 = arith.constant 0 : i32
    %c0_i32_1 = arith.constant 0 : i32
    return %c0_i32, %c0_i32_0 : i32, i32
  }
  func.func @transform_2(%arg0: i32) -> (i32, i32) {
    %c0_i32 = arith.constant 0 : i32
    %c0_i32_0 = arith.constant 0 : i32
    %c0_i32_1 = arith.constant 0 : i32
    return %c0_i32, %c0_i32_0 : i32, i32
  }
  func.func @transform_3(%arg0: i32) -> (i32, i32, i32) {
    %c0_i32 = arith.constant 0 : i32
    %c0_i32_0 = arith.constant 0 : i32
    %c0_i32_1 = arith.constant 0 : i32
    return %arg0, %c0_i32, %c0_i32_0 : i32, i32, i32
  }
  func.func @transform_4(%arg0: i32) -> (i32, i32, i32) {
    %c0_i32 = arith.constant 0 : i32
    %c0_i32_0 = arith.constant 0 : i32
    %c0_i32_1 = arith.constant 0 : i32
    return %arg0, %c0_i32, %c0_i32_0 : i32, i32, i32
  }
  func.func @transform_5(%arg0: i32) -> (i32, i32, i32) {
    %c0_i32 = arith.constant 0 : i32
    %c0_i32_0 = arith.constant 0 : i32
    %c0_i32_1 = arith.constant 0 : i32
    return %arg0, %c0_i32, %c0_i32_0 : i32, i32, i32
  }
  func.func @transform_6(%arg0: i32) -> (i32, i32, i32) {
    %c0_i32 = arith.constant 0 : i32
    %c0_i32_0 = arith.constant 0 : i32
    %c0_i32_1 = arith.constant 0 : i32
    return %arg0, %c0_i32, %c0_i32_0 : i32, i32, i32
  }
  func.func @transform_7(%arg0: i32) -> (i32, i32, i32) {
    %c0_i32 = arith.constant 0 : i32
    %c0_i32_0 = arith.constant 0 : i32
    %c0_i32_1 = arith.constant 0 : i32
    return %arg0, %c0_i32, %c0_i32_0 : i32, i32, i32
  }
  func.func @transform_8(%arg0: i32) -> (i32, i32, i32) {
    %c0_i32 = arith.constant 0 : i32
    %c0_i32_0 = arith.constant 0 : i32
    %c0_i32_1 = arith.constant 0 : i32
    return %arg0, %c0_i32, %c0_i32_0 : i32, i32, i32
  }
  func.func @transform_9(%arg0: i32) -> (i32, i32, i32) {
    %c0_i32 = arith.constant 0 : i32
    %c0_i32_0 = arith.constant 0 : i32
    %c0_i32_1 = arith.constant 0 : i32
    return %arg0, %c0_i32, %c0_i32_0 : i32, i32, i32
  }
  func.func @transform_10(%arg0: i32) -> (i32, i32) {
    %c0_i32 = arith.constant 0 : i32
    %c0_i32_0 = arith.constant 0 : i32
    %c0_i32_1 = arith.constant 0 : i32
    return %c0_i32, %c0_i32_0 : i32, i32
  }
  func.func @transform_11(%arg0: i32) -> (i32, i32) {
    %c0_i32 = arith.constant 0 : i32
    %c0_i32_0 = arith.constant 0 : i32
    %c0_i32_1 = arith.constant 0 : i32
    return %c0_i32, %c0_i32_0 : i32, i32
  }
  func.func @transform_14(%arg0: i32) -> (i32, i32) {
    %c0_i32 = arith.constant 0 : i32
    %c0_i32_0 = arith.constant 0 : i32
    %c0_i32_1 = arith.constant 0 : i32
    return %c0_i32, %c0_i32_0 : i32, i32
  }
}

</mosaic_0001>

<bundles_post_ra>
// kernel: qwen2_decode_step.1
= control target key start
LH: loop header
LB: loop body
LE: loop exit
PB: predicated region body
PF: predicated region fallthrough
CT: control target
= control target key end

     0   :  { %s2951_s24 = smov 0   ;;  %s3503_s0 = inlined_call_operand.<no memory space> [shape: s32[1], index: 0, kind: input, shape index: {}]   ;;  %s3504_s1 = inlined_call_operand.vmem [shape: f32[2,64], index: 1, kind: input, shape index: {}]   ;;  %s3505_s2 = inlined_call_operand.vmem [shape: f32[2,8], index: 2, kind: input, shape index: {}]   ;;  %s3506_s3 = inlined_call_operand.vmem [shape: f32[2,1,64], index: 3, kind: input, shape index: {}]   ;;  %s3507_s4 = inlined_call_operand.vmem [shape: f32[2,64,128], index: 4, kind: input, shape index: {}]   ;;  %s3508_s5 = inlined_call_operand.vmem [shape: f32[2,1,128], index: 5, kind: input, shape index: {}]   ;;  %s3509_s6 = inlined_call_operand.vmem [shape: f32[2,64,64], index: 6, kind: input, shape index: {}]   ;;  %s3510_s7 = inlined_call_operand.vmem [shape: f32[2,1,64], index: 7, kind: input, shape index: {}]   ;;  %s3511_s8 = inlined_call_operand.vmem [shape: f32[2,64,256], index: 8, kind: input, shape index: {}]   ;;  %s3512_s9 = inlined_call_operand.vmem [shape: f32[2,128,64], index: 9, kind: input, shape index: {}]   ;;  %s3513_s10 = inlined_call_operand.vmem [shape: f32[1,64], index: 10, kind: input, shape index: {}]   ;;  %s3514_s11 = inlined_call_operand.vmem [shape: f32[64,256], index: 11, kind: input, shape index: {}]   ;;  %s3515_s12 = inlined_call_operand.vmem [shape: f32[2,32,128], index: 12, kind: input, shape index: {}, may-alias: {12,15}]   ;;  %s3516_s13 = inlined_call_operand.vmem [shape: f32[2,32,128], index: 13, kind: input, shape index: {}, may-alias: {13,16}]   ;;  %s3517_s14 = inlined_call_operand.vmem [shape: f32[2,256], index: 14, kind: output, shape index: {0}]   ;;  %s3518_s15 = inlined_call_operand.vmem [shape: f32[2,32,128], index: 15, kind: output, shape index: {1}, may-alias: {12,15}]   ;;  %s3519_s16 = inlined_call_operand.vmem [shape: f32[2,32,128], index: 16, kind: output, shape index: {2}, may-alias: {13,16}]  }
   0x1   :  { %3525 = sst [smem:[#allocation19_spill]] %s3503_s0 }
   0x2   :  { %3526 = sst [smem:[#allocation20_spill]] %s3507_s4 }
   0x3   :  { %3527 = sst [smem:[#allocation21_spill]] %s3513_s10 }
   0x4   :  { %3528 = sst [smem:[#allocation22_spill]] %s3515_s12 }
   0x5   :  { %3529 = sst [smem:[#allocation23_spill]] %s3517_s14 }
   0x6   :  { %s3530_s23 = sld [smem:[#allocation19_spill]] }
   0xc   :  { %22 = sst [smem:[#allocation9]] %s3530_s23 }
   0xd LB: > { %3531 = sst [smem:[#allocation18_spill]] %s2844_s24  ;;  %s2957_s25 = sadd.s32 4294967295, %s2844_s24   ;;  %s2844_s24 = sphi %s2951_s24, %s28_s24  }
   0xe   : > { %p2485_p0 = scmp.ge.s32.totalorder %s2844_s24, 1  ;;  %p417_p1 = scmp.lt.s32.totalorder %s2844_s24, 3 }
  0x10   : > { %p418_p2 = pnand %p2485_p0, %p417_p1 }
  0x11   : > { %p478_p3 = scmp.lt.s32.totalorder (!%p418_p2), %s2957_s25, 1  ;;  %s2962_s26 = sld [smem:[#allocation9]] (!%p418_p2) }
  0x12   : > { %421 = sbr.rel (%p418_p2) target bundleno = 3997 (0xf9d), region = 68  ;;  %s2965_s27 = sshll.u32 (!%p418_p2), %s2957_s25, 5 }
  0x13   : > { %s3532_s12 = sld [smem:[#allocation22_spill]] (!%p418_p2) }
  0x14   : > { %s3533_s4 = sld [smem:[#allocation20_spill]] (!%p418_p2) }
  0x17   : > { %s2968_s28 = scalar_select %p478_p3, %s2957_s25, 1 }
  0x19   : > { %s509_s0 = scalar_lea.vmem %s3532_s12, %s2965_s27  ;;  %s2539_s20 = sshll.u32 %s2968_s28, 6 }
  0x1a   : > { %v543_v0 = vld [vmem:[%s509_s0] sm:$0xff]  ;;  %v545_v1 = vld [vmem:[%s509_s0 + $0x8] sm:$0xff]  ;;  %v547_v2 = vld [vmem:[%s509_s0 + $0x10] sm:$0xff]  ;;  %s2982_s23 = scalar_lea.vmem %s3533_s4, %s2539_s20  ;;  %s2991_s18 = scalar_lea.vmem %s3509_s6, %s2539_s20 }
  0x1b   : > { %544 = vst [vmem:[#allocation6] sm:$0xff] %v543_v0  ;;  %546 = vst [vmem:[#allocation6 + $0x8] sm:$0xff] %v545_v1  ;;  %v549_v3 = vld [vmem:[%s509_s0 + $0x18] sm:$0xff]  ;;  %s2541_s21 = sshll.u32 %s2968_s28, 7 }
  0x1c   : > { %548 = vst [vmem:[#allocation6 + $0x10] sm:$0xff] %v547_v2  ;;  %550 = vst [vmem:[#allocation6 + $0x18] sm:$0xff] %v549_v3  ;;  %s3001_s29 = scalar_lea.vmem %s3511_s8, %s2541_s21  ;;  %s3006_s0 = scalar_lea.vmem %s3512_s9, %s2541_s21 }
  0x1d   : > { %558 = vsyncadd [#allocation8], 512  ;;  %s559_s17 = scalar_lea.vmem %s3516_s13, %s2965_s27 }
  0x1e   : > { %v594_v4 = vld [vmem:[%s559_s17] sm:$0xff]  ;;  %v596_v5 = vld [vmem:[%s559_s17 + $0x8] sm:$0xff]  ;;  %v598_v6 = vld [vmem:[%s559_s17 + $0x10] sm:$0xff] }
  0x1f   : > { %595 = vst [vmem:[#allocation7] sm:$0xff] %v594_v4  ;;  %597 = vst [vmem:[#allocation7 + $0x8] sm:$0xff] %v596_v5  ;;  %v600_v7 = vld [vmem:[%s559_s17 + $0x18] sm:$0xff] }
  0x20   : > { %599 = vst [vmem:[#allocation7 + $0x10] sm:$0xff] %v598_v6  ;;  %601 = vst [vmem:[#allocation7 + $0x18] sm:$0xff] %v600_v7 }
  0x21   : > { %609 = vsyncadd [#allocation8 + $0x1], 512  ;;  %p2495_p4 = scmp.ne.s32.totalorder %s2957_s25, 0 }
  0x23   : > { %613 = sbr.rel (%p2495_p4) target bundleno = 42 (0x2a), region = 140 }
  0x28   : > { %v614_v8 = vld [vmem:[%s3504_s1] sm:$0x3]  ;;  %vm615_vm0 = vcmask 517120  }
  0x29   : > { %616 = vst.msk [vmem:[#allocation2] sm:$0x3] %vm615_vm0, %v614_v8 }
  0x2a PF: > { %vm619_vm1 = vcmask 517120   ;;  %v643_v12 = vld [vmem:[%s2982_s23 + $0x38] sm:$0xff]  ;;  %v2846_v13 = vmov 0.0   ;;  %v642_v14 = vld [vmem:[%s2982_s23 + $0x30] sm:$0xff]  ;;  %vm2847_vm2 = vmmov 0   ;;  %v641_v15 = vld [vmem:[%s2982_s23 + $0x28] sm:$0xff]  ;;  %s3534_s12 = scalar_lea.vmem %s3506_s3, %s2968_s28 }
  0x2b   : > { %2618 = vmatprep.subr.mxu1 %v2846_v13  ;;  %2634 = vmatprep.mubr.msk.f32.mxu1 %vm2847_vm2, %v2846_v13  ;;  %v640_v16 = vld [vmem:[%s2982_s23 + $0x20] sm:$0xff]  ;;  %v639_v17 = vld [vmem:[%s2982_s23 + $0x18] sm:$0xff]  ;;  %v638_v18 = vld [vmem:[%s2982_s23 + $0x10] sm:$0xff]  ;;  %s2848_s21 = smov 24   ;;  %s2849_s22 = smov 8   ;;  %vm651_vm3 = vcmask 523264  }
  0x2c   : > { %2619 = vmatpush3.msra.mxu1 %v643_v12  ;;  %v637_v19 = vld [vmem:[%s2982_s23 + $0x8] sm:$0xff]  ;;  %v636_v20 = vld [vmem:[%s2982_s23] sm:$0xff]  ;;  %s2850_s30 = smov 40   ;;  %s2851_s20 = smov 56   ;;  %vm747_vm4 = vcmask 58368   ;;  %vm764_vm5 = vcmask 123968  }
  0x2d   : > { %2620 = vmatprep.subr.mxu1 %v2846_v13  ;;  %v3042_v21 = vld [vmem:[%s3505_s2] ss:$0 sm:$0xff]  ;;  %v3051_v22 = vld [vmem:[%s3505_s2 + $0x1] ss:$0 sm:$0xff]  ;;  %s3523_s17 = smov 32   ;;  %s2853_s4 = smov 72  }
  0x2e   : > { %2621 = vmatpush3.msra.mxu1 %v642_v14  ;;  %785 = vrot.lane.b32.xlu1 %v3042_v21, %s2848_s21  ;;  %s2854_s14 = smov 88   ;;  %s2855_s24 = smov 64   ;;  %v2496_v27 = vld [vmem:[%s3534_s12] ss:$0 sm:$0xff]  ;;  %vm779_vm6 = vcmask 189568   ;;  %vm798_vm7 = vcmask 255168  }
  0x2f   : > { %2622 = vmatprep.subr.mxu1 %v2846_v13  ;;  %s2856_s19 = smov 16   ;;  %s2858_s23 = smov 120   ;;  %vm813_vm8 = vcmask 320768   ;;  %vm832_vm9 = vcmask 386368   ;;  %vm847_vm10 = vcmask 451968   ;;  %vm866_vm11 = vcmask 517568  }
  0x30   : > { %v3016_v9 = vld [vmem:[#allocation2] sm:$0x3]  ;;  %2623 = vmatpush3.msra.mxu1 %v641_v15  ;;  %vm881_vm12 = vcmask 583168   ;;  %vm900_vm13 = vcmask 648768   ;;  %vm915_vm14 = vcmask 714368   ;;  %vm934_vm15 = vcmask 779968  }
  0x31   : > { %v618_v10 = vmul.f32 %v3016_v9, %v3016_v9  ;;  %2624 = vmatprep.subr.mxu1 %v2846_v13 }
  0x32   : > { %2625 = vmatpush3.msra.mxu1 %v640_v16  ;;  %819 = vrot.lane.b32.xlu1 %v3042_v21, %s2850_s30 }
  0x33   : > { %v620_v11 = vsel %vm619_vm1, %v618_v10, 0.0  ;;  %2626 = vmatprep.subr.mxu1 %v2846_v13 }
  0x34   : > { %621 = vadd.xlane.f32.xlu0 %v620_v11  ;;  %2627 = vmatpush3.msra.mxu1 %v639_v17 }
  0x35   : > { %2628 = vmatprep.subr.mxu1 %v2846_v13 }
  0x36   : > { %2629 = vmatpush3.msra.mxu1 %v638_v18  ;;  %853 = vrot.lane.b32.xlu1 %v3042_v21, %s2851_s20 }
  0x37   : > { %2630 = vmatprep.subr.mxu1 %v2846_v13 }
  0x38   : > { %2631 = vmatpush3.msra.mxu1 %v637_v19 }
  0x39   : > { %2632 = vmatprep.subr.mxu1 %v2846_v13 }
  0x3a   : > { %2633 = vmatpush3.msra.mxu1 %v636_v20  ;;  %887 = vrot.lane.b32.xlu1 %v3042_v21, %s2853_s4 }
  0x3e   : > { %921 = vrot.lane.b32.xlu1 %v3042_v21, %s2854_s14 }
  0x42   : > { %738 = vrot.lane.b32.xlu1 %v3051_v22, %s2849_s22 }
  0x46   : > { %770 = vrot.lane.b32.xlu1 %v3051_v22, %s2848_s21  ;;  %s2859_s21 = smov 80  }
  0x4a   : > { %751 = vrot.lane.b32.xlu0 %v3042_v21, %s2849_s22  ;;  %781 = vrot.lane.b32.xlu1 %v3051_v22, %s2856_s19 }
  0x4e   : > { %804 = vrot.lane.b32.xlu0 %v3051_v22, %s2850_s30  ;;  %838 = vrot.lane.b32.xlu1 %v3051_v22, %s2851_s20  ;;  %s3521_s30 = smov 48  }
  0x52   : > { %815 = vrot.lane.b32.xlu0 %v3051_v22, %s3523_s17  ;;  %849 = vrot.lane.b32.xlu1 %v3051_v22, %s3521_s30 }
  0x56   : > { %872 = vrot.lane.b32.xlu0 %v3051_v22, %s2853_s4  ;;  %906 = vrot.lane.b32.xlu1 %v3051_v22, %s2854_s14  ;;  %s3535_s14 = scalar_lea.vmem %s3508_s5, %s2968_s28 }
  0x57   : > { %v2497_v33 = vld [vmem:[%s3535_s14] ss:$0 sm:$0xff] }
  0x5a   : > { %883 = vrot.lane.b32.xlu0 %v3051_v22, %s2855_s24 }
  0xa0   : > { %v786_v30 = vpop.permute.xlu1 %785 }
  0xa4   : > { %v820_v31 = vpop.permute.xlu1 %819 }
  0xa8   : > { %v854_v32 = vpop.permute.xlu1 %853 }
  0xac   : > { %v888_v34 = vpop.permute.xlu1 %887 }
  0xb0   : > { %v922_v41 = vpop.permute.xlu1 %921 }
  0xb4   : > { %v739_v45 = vpop.permute.xlu1 %738 }
  0xb8   : > { %v771_v47 = vpop.permute.xlu1 %770 }
  0xbc   : > { %v782_v50 = vpop.permute.xlu1 %781 }
  0xbd   : > { %v622_v23 = vpop.xlane.xlu0 %621 }
  0xbe   : > { %v624_v24 = vmul.f32 0.015625, %v622_v23 }
  0xc0   : > { %v625_v25 = vadd.f32 1e-06, %v624_v24  ;;  %v839_v53 = vpop.permute.xlu1 %838 }
  0xc1   : > { %v752_v37 = vpop.permute.xlu0 %751 }
  0xc2   : > { %2804 = vrsqrt.f32 %v625_v25 }
  0xc4   : > { %v850_v58 = vpop.permute.xlu1 %849 }
  0xc5   : > { %v805_v48 = vpop.permute.xlu0 %804 }
  0xc8   : > { %v907_v59 = vpop.permute.xlu1 %906 }
  0xc9   : > { %v816_v52 = vpop.permute.xlu0 %815 }
  0xcd   : > { %v873_v56 = vpop.permute.xlu0 %872 }
  0xcf   : > { %v2805_v26 = vpop.eup %2804 }
  0xd0   : > { %v627_v28 = vmul.f32 %v2805_v26, %v3016_v9 }
  0xd1   : > { %v884_v60 = vpop.permute.xlu0 %883 }
  0xd2   : > { %v635_v29 = vmul.f32 %v2496_v27, %v627_v28 }
  0xd4   : > { %2635 = vmatmul.mubr.msk.f32.vlgmr.msra.gmra.mxu1 %vm651_vm3, %v635_v29 }
 0x194   : > { %v721_v35 = vpop.f32.mrf.mxu1 }
 0x195   : > { %v3083_v36 = vadd.f32 %v2497_v33, %v721_v35 }
 0x196   : > { %v2636_v38 = vpop.f32.mrf.mxu1 }
 0x197   : > { %727 = vst [vmem:[#allocation3] sm:$0x3] %v3083_v36  ;;  %v788_v39 = vmul.f32 %v786_v30, %v3083_v36  ;;  %v754_v40 = vmul.f32 %v752_v37, %v3083_v36  ;;  %v856_v42 = vmul.f32 %v854_v32, %v3083_v36  ;;  %v822_v43 = vmul.f32 %v820_v31, %v3083_v36 }
 0x198   : > { %v890_v44 = vmul.f32 %v888_v34, %v3083_v36  ;;  %v924_v46 = vmul.f32 %v922_v41, %v3083_v36  ;;  %v741_v49 = vmul.f32 %v739_v45, %v3083_v36  ;;  %v773_v51 = vmul.f32 %v771_v47, %v3083_v36 }
 0x199   : > { %790 = vrot.lane.b32.xlu1 %v788_v39, %s2858_s23  ;;  %756 = vrot.lane.b32.xlu0 %v754_v40, %s2858_s23  ;;  %v841_v54 = vmul.f32 %v839_v53, %v3083_v36  ;;  %v807_v55 = vmul.f32 %v805_v48, %v3083_v36  ;;  %v875_v57 = vmul.f32 %v873_v56, %v3083_v36 }
 0x19a   : > { %v784_v61 = vmul.f32 %v782_v50, %v3083_v36  ;;  %v749_v62 = vmul.f32 %v3051_v22, %v3083_v36  ;;  %v852_v3 = vmul.f32 %v850_v58, %v3083_v36  ;;  %v818_v4 = vmul.f32 %v816_v52, %v3083_v36 }
 0x19b   : > { %v886_v10 = vmul.f32 %v884_v60, %v3083_v36  ;;  %v909_v14 = vmul.f32 %v907_v59, %v3083_v36 }
 0x19d   : > { %858 = vrot.lane.b32.xlu1 %v856_v42, %s2858_s23  ;;  %824 = vrot.lane.b32.xlu0 %v822_v43, %s2858_s23 }
 0x1a1   : > { %917 = vrot.lane.b32.xlu1 %v3051_v22, %s2859_s21  ;;  %892 = vrot.lane.b32.xlu0 %v890_v44, %s2858_s23  ;;  %v732_v22 = vmul.f32 %v3042_v21, %v3083_v36 }
 0x1a5   : > { %834 = vrot.lane.b32.xlu1 %v3042_v21, %s3521_s30  ;;  %926 = vrot.lane.b32.xlu0 %v924_v46, %s2858_s23 }
 0x1a9   : > { %902 = vrot.lane.b32.xlu1 %v3042_v21, %s2859_s21  ;;  %766 = vrot.lane.b32.xlu0 %v3042_v21, %s2856_s19 }
 0x1ad   : > { %743 = vrot.lane.b32.xlu1 %v741_v49, %s2858_s23  ;;  %800 = vrot.lane.b32.xlu0 %v3042_v21, %s3523_s17 }
 0x1b1   : > { %775 = vrot.lane.b32.xlu1 %v773_v51, %s2858_s23  ;;  %868 = vrot.lane.b32.xlu0 %v3042_v21, %s2855_s24 }
 0x1b5   : > { %843 = vrot.lane.b32.xlu1 %v841_v54, %s2858_s23  ;;  %809 = vrot.lane.b32.xlu0 %v807_v55, %s2858_s23 }
 0x1b9   : > { %877 = vrot.lane.b32.xlu0 %v875_v57, %s2858_s23 }
 0x20b   : > { %v791_v63 = vpop.permute.xlu1 %790  ;;  %v757_v0 = vpop.permute.xlu0 %756 }
 0x20c   : > { %v793_v1 = vadd.f32 %v791_v63, %v784_v61  ;;  %v759_v2 = vadd.f32 %v757_v0, %v749_v62 }
 0x20e   : > { %795 = vrot.lane.b32.xlu0 %v793_v1, %s2849_s22  ;;  %761 = vrot.lane.b32.xlu1 %v759_v2, %s2849_s22 }
 0x20f   : > { %v859_v5 = vpop.permute.xlu1 %858  ;;  %v825_v6 = vpop.permute.xlu0 %824 }
 0x210   : > { %v861_v7 = vadd.f32 %v859_v5, %v852_v3  ;;  %v827_v8 = vadd.f32 %v825_v6, %v818_v4 }
 0x212   : > { %863 = vrot.lane.b32.xlu0 %v861_v7, %s2849_s22  ;;  %829 = vrot.lane.b32.xlu1 %v827_v8, %s2849_s22 }
 0x213   : > { %v918_v11 = vpop.permute.xlu1 %917  ;;  %v893_v12 = vpop.permute.xlu0 %892 }
 0x214   : > { %v895_v15 = vadd.f32 %v893_v12, %v886_v10  ;;  %v920_v16 = vmul.f32 %v918_v11, %v3083_v36 }
 0x216   : > { %911 = vrot.lane.b32.xlu1 %v909_v14, %s2858_s23  ;;  %897 = vrot.lane.b32.xlu0 %v895_v15, %s2849_s22 }
 0x217   : > { %v835_v17 = vpop.permute.xlu1 %834  ;;  %v927_v18 = vpop.permute.xlu0 %926 }
 0x218   : > { %v929_v19 = vadd.f32 %v927_v18, %v920_v16  ;;  %v837_v37 = vmul.f32 %v835_v17, %v3083_v36 }
 0x21a   : > { %931 = vrot.lane.b32.xlu1 %v929_v19, %s2849_s22 }
 0x21b   : > { %v903_v20 = vpop.permute.xlu1 %902  ;;  %v767_v25 = vpop.permute.xlu0 %766 }
 0x21c   : > { %v769_v32 = vmul.f32 %v767_v25, %v3083_v36  ;;  %v905_v44 = vmul.f32 %v903_v20, %v3083_v36 }
 0x21f   : > { %v744_v23 = vpop.permute.xlu1 %743  ;;  %v801_v26 = vpop.permute.xlu0 %800 }
 0x220   : > { %v746_v24 = vsub.f32 %v732_v22, %v744_v23  ;;  %v803_v33 = vmul.f32 %v801_v26, %v3083_v36 }
 0x222   : > { %748 = vst.msk [vmem:[#allocation3] sm:$0x3] %vm747_vm4, %v746_v24 }
 0x223   : > { %v869_v27 = vpop.permute.xlu0 %868  ;;  %v776_v28 = vpop.permute.xlu1 %775 }
 0x224   : > { %v778_v34 = vsub.f32 %v769_v32, %v776_v28  ;;  %v871_v39 = vmul.f32 %v869_v27, %v3083_v36 }
 0x227   : > { %v810_v29 = vpop.permute.xlu0 %809  ;;  %v844_v30 = vpop.permute.xlu1 %843 }
 0x228   : > { %v812_v38 = vsub.f32 %v803_v33, %v810_v29  ;;  %v846_v40 = vsub.f32 %v837_v37, %v844_v30 }
 0x22b   : > { %v878_v31 = vpop.permute.xlu0 %877 }
 0x22c   : > { %v880_v43 = vsub.f32 %v871_v39, %v878_v31 }
 0x280   : > { %v762_v35 = vpop.permute.xlu1 %761  ;;  %v796_v21 = vpop.permute.xlu0 %795 }
 0x281   : > { %765 = vst.msk [vmem:[#allocation3] sm:$0x3] %vm764_vm5, %v762_v35 }
 0x282   : > { %780 = vst.msk [vmem:[#allocation3] sm:$0x3] %vm779_vm6, %v778_v34 }
 0x283   : > { %799 = vst.msk [vmem:[#allocation3] sm:$0x3] %vm798_vm7, %v796_v21 }
 0x284   : > { %v830_v41 = vpop.permute.xlu1 %829  ;;  %814 = vst.msk [vmem:[#allocation3] sm:$0x3] %vm813_vm8, %v812_v38  ;;  %v864_v42 = vpop.permute.xlu0 %863 }
 0x285   : > { %833 = vst.msk [vmem:[#allocation3] sm:$0x3] %vm832_vm9, %v830_v41 }
 0x286   : > { %848 = vst.msk [vmem:[#allocation3] sm:$0x3] %vm847_vm10, %v846_v40 }
 0x287   : > { %867 = vst.msk [vmem:[#allocation3] sm:$0x3] %vm866_vm11, %v864_v42 }
 0x288   : > { %v912_v45 = vpop.permute.xlu1 %911  ;;  %882 = vst.msk [vmem:[#allocation3] sm:$0x3] %vm881_vm12, %v880_v43  ;;  %v898_v46 = vpop.permute.xlu0 %897 }
 0x289   : > { %v914_v47 = vsub.f32 %v905_v44, %v912_v45  ;;  %901 = vst.msk [vmem:[#allocation3] sm:$0x3] %vm900_vm13, %v898_v46 }
 0x28b   : > { %916 = vst.msk [vmem:[#allocation3] sm:$0x3] %vm915_vm14, %v914_v47 }
 0x28c   : > { %v932_v48 = vpop.permute.xlu1 %931 }
 0x28d   : > { %935 = vst.msk [vmem:[#allocation3] sm:$0x3] %vm934_vm15, %v932_v48 }
 0x294   : > { %v936_v49 = vld [vmem:[#allocation3] sm:$0x3] }
 0x295   : > { %2834 = dma.done.wait [#allocation8], 512 }
 0x296   : > { %2835 = vsyncadd [#allocation8], 4294966784  ;;  %949 = vrot.lane.b32.xlu1 %v936_v49, %s3523_s17  ;;  %943 = vrot.lane.b32.xlu0 %v936_v49, %s2855_s24 }
 0x297   : > { %2836 = dma.done.wait [#allocation8 + $0x1], 512 }
 0x298   : > { %2837 = vsyncadd [#allocation8 + $0x1], 4294966784  ;;  %s2860_s22 = smov 96   ;;  %vm947_vm0 = vcmask 253952   ;;  %vm957_vm4 = vcmask 517377   ;;  %s946_s12 = scalar_lea.vmem [#allocation6], %s2962_s26 }
 0x299   : > { %s952_s20 = scalar_lea.vmem [#allocation7], %s2962_s26  ;;  %s960_s24 = sadd.s32 %s2965_s27, %s2962_s26 }
 0x29a   : > { %954 = vrot.lane.b32.xlu0 %v936_v49, %s2860_s22  ;;  %s961_s23 = scalar_lea.vmem %s3518_s15, %s960_s24 }
 0x308   : > { %v950_v36 = vpop.permute.xlu1 %949  ;;  %v944_v50 = vpop.permute.xlu0 %943 }
 0x309   : > { %948 = vst.msk [vmem:[%s946_s12] sm:$0x1] %vm947_vm0, %v944_v50  ;;  %953 = vst.msk [vmem:[%s952_s20] sm:$0x1] %vm947_vm0, %v950_v36 }
 0x30a   : > { %959 = vst.msk [vmem:[%s952_s20 - $0x1] sm:$0x2] %vm957_vm4, %v944_v50 }
 0x30c   : > { %v955_v51 = vpop.permute.xlu0 %954 }
 0x30d   : > { %958 = vst.msk [vmem:[%s946_s12 - $0x1] sm:$0x2] %vm957_vm4, %v955_v51 }
 0x314   : > { %v981_v52 = vld [vmem:[%s946_s12] sm:$0x1] }
 0x315   : > { %982 = vst [vmem:[%s961_s23] sm:$0x1] %v981_v52 }
 0x316   : > { %1008 = vsyncadd [#allocation8 + $0x2], 16  ;;  %s1009_s17 = scalar_lea.vmem %s3519_s16, %s960_s24  ;;  %v1029_v53 = vld [vmem:[%s952_s20] sm:$0x1]  ;;  %v3155_v54 = vld [vmem:[#allocation6 + $0x18] sm:$0xff]  ;;  %2637 = vmatprep.subr.mxu1 %v2846_v13  ;;  %vm1086_vm5 = vcmask 130048   ;;  %2645 = vmatprep.mubr.msk.f32.mxu1 %vm2847_vm2, %v2846_v13 }
 0x317   : > { %1030 = vst [vmem:[%s1009_s17] sm:$0x1] %v1029_v53  ;;  %vm1068_vm6 = vcmask 123905   ;;  %s2861_s27 = smov 112  }
 0x318   : > { %1059 = vrot.lane.b32.xlu0 %v936_v49, %s2861_s27  ;;  %1288 = vrot.lane.b32.xlu1 %v3155_v54, %s2861_s27 }
 0x319   : > { %1056 = vsyncadd [#allocation8 + $0x3], 16  ;;  %1069 = vst.msk [vmem:[#allocation4 + $0x3] sm:$0x2] %vm1068_vm6, %v936_v49  ;;  %vm1057_vm7 = vcmask 122880   ;;  %v3165_v55 = vld [vmem:[#allocation6 + $0x10] sm:$0xff]  ;;  %2638 = vmatpush3.xpose.msk.msra.mxu1 %vm1086_vm5, %v3155_v54  ;;  %2648 = vmatprep.subr.mxu0 %v2846_v13  ;;  %v1074_v2 = vlaneseq  ;;  %v1076_v4 = vstv %s2962_s26 }
 0x31a   : > { %1071 = vst.msk [vmem:[#allocation4 + $0x5] sm:$0x2] %vm1068_vm6, %v955_v51  ;;  %2639 = vmatprep.subr.mxu1 %v2846_v13  ;;  %2656 = vmatprep.mubr.msk.f32.mxu0 %vm2847_vm2, %v2846_v13  ;;  %v3178_v56 = vld [vmem:[#allocation6 + $0x8] sm:$0xff]  ;;  %v3180_v57 = vld [vmem:[#allocation6] sm:$0xff]  ;;  %vm1176_vm9 = vcmask 254976   ;;  %v3228_v18 = vld [vmem:[#allocation7 + $0x18] sm:$0xff] }
 0x31b   : > { %1058 = vst.msk [vmem:[#allocation4] sm:$0x1] %vm1057_vm7, %v936_v49  ;;  %1063 = vst.msk [vmem:[#allocation4 + $0x2] sm:$0x1] %vm1057_vm7, %v955_v51  ;;  %v1075_v3 = vand.u32 127, %v1074_v2  ;;  %2649 = vmatpush3.msra.mxu0 %v3228_v18  ;;  %v3233_v19 = vld [vmem:[#allocation7 + $0x10] sm:$0xff] }
 0x31c   : > { %1064 = vrot.lane.b32.xlu0 %v936_v49, %s2859_s21  ;;  %1286 = vrot.lane.b32.xlu1 %v3165_v55, %s2861_s27  ;;  %v3238_v20 = vld [vmem:[#allocation7 + $0x8] sm:$0xff]  ;;  %v3243_v22 = vld [vmem:[#allocation7] sm:$0xff]  ;;  %vm1188_vm10 = vcmask 261120   ;;  %s3538_s10 = smov 32   ;;  %s3539_s26 = smov 48   ;;  %vm1267_vm11 = vcmask 255105  }
 0x31d   : > { %2640 = vmatpush3.xpose.msk.msra.mxu1 %vm1086_vm5, %v3165_v55  ;;  %vm3218_vm8 = vcmp.le.s32.totalorder %v1075_v3, %v1076_v4  ;;  %2650 = vmatprep.subr.mxu0 %v2846_v13  ;;  %vm1476_vm12 = vcmask 385280   ;;  %vm1481_vm13 = vcmask 517505   ;;  %p2529_p5 = scmp.ne.s32.totalorder %s2957_s25, 1 }
 0x31e   : > { %2641 = vmatprep.subr.mxu1 %v2846_v13  ;;  %2651 = vmatpush3.msra.mxu0 %v3233_v19 }
 0x31f   : > { %2652 = vmatprep.subr.mxu0 %v2846_v13 }
 0x320   : > { %1284 = vrot.lane.b32.xlu0 %v3178_v56, %s2861_s27  ;;  %1282 = vrot.lane.b32.xlu1 %v3180_v57, %s2861_s27 }
 0x321   : > { %2642 = vmatpush3.xpose.msk.msra.mxu1 %vm1086_vm5, %v3178_v56  ;;  %2653 = vmatpush3.msra.mxu0 %v3238_v20 }
 0x322   : > { %2643 = vmatprep.subr.mxu1 %v2846_v13  ;;  %2654 = vmatprep.subr.mxu0 %v2846_v13 }
 0x323   : > { %2655 = vmatpush3.msra.mxu0 %v3243_v22 }
 0x324   : > { %2670 = vmatprep.subr.mxu0 %v2846_v13 }
 0x325   : > { %2644 = vmatpush3.xpose.msk.msra.mxu1 %vm1086_vm5, %v3180_v57 }
 0x326   : > { %2659 = vmatprep.subr.mxu1 %v2846_v13 }
 0x38a   : > { %v1060_v58 = vpop.permute.xlu0 %1059  ;;  %v1289_v60 = vpop.permute.xlu1 %1288 }
 0x38b   : > { %1062 = vst.msk [vmem:[#allocation4 + $0x1] sm:$0x1] %vm1057_vm7, %v1060_v58 }
 0x38c   : > { %1070 = vst.msk [vmem:[#allocation4 + $0x4] sm:$0x2] %vm1068_vm6, %v1060_v58 }
 0x38e   : > { %v1065_v59 = vpop.permute.xlu0 %1064  ;;  %v1287_v62 = vpop.permute.xlu1 %1286 }
 0x38f   : > { %1067 = vst.msk [vmem:[#allocation4 + $0x3] sm:$0x1] %vm1057_vm7, %v1065_v59 }
 0x390   : > { %1072 = vst.msk [vmem:[#allocation4 + $0x6] sm:$0x2] %vm1068_vm6, %v1065_v59 }
 0x392   : > { %v1285_v63 = vpop.permute.xlu0 %1284  ;;  %v1283_v0 = vpop.permute.xlu1 %1282 }
 0x397   : > { %v3199_v61 = vld [vmem:[#allocation4] sm:$0xff] }
 0x398   : > { %2646 = vmatmul.mubr.msk.f32.vlgmr.msra.gmra.mxu1 %vm1086_vm5, %v3199_v61  ;;  %v1277_v1 = vrot.slane %v3199_v61, 2  ;;  %v1491_v47 = vrot.slane %v3199_v61, 4 }
 0x399   : > { %2660 = vmatpush3.xpose.msk.msra.mxu1 %vm1086_vm5, %v1289_v60  ;;  %2667 = vmatprep.mubr.msk.f32.mxu1 %vm2847_vm2, %v2846_v13 }
 0x39a   : > { %2661 = vmatprep.subr.mxu1 %v2846_v13 }
 0x39d   : > { %2662 = vmatpush3.xpose.msk.msra.mxu1 %vm1086_vm5, %v1287_v62 }
 0x39e   : > { %2663 = vmatprep.subr.mxu1 %v2846_v13 }
 0x3a1   : > { %2664 = vmatpush3.xpose.msk.msra.mxu1 %vm1086_vm5, %v1285_v63 }
 0x3a2   : > { %2665 = vmatprep.subr.mxu1 %v2846_v13 }
 0x3a5   : > { %2666 = vmatpush3.xpose.msk.msra.mxu1 %vm1086_vm5, %v1283_v0 }
 0x3a6   : > { %2692 = vmatprep.subr.mxu1 %v2846_v13 }
 0x3a8   : > { %2668 = vmatmul.mubr.msk.f32.vlgmr.msra.gmra.mxu1 %vm1086_vm5, %v1277_v1 }
 0x3a9   : > { %2700 = vmatprep.mubr.msk.f32.mxu1 %vm2847_vm2, %v2846_v13 }
 0x458   : > { %v1168_v5 = vpop.f32.mrf.mxu1 }
 0x459   : > { %v1172_v7 = vmul.f32 0.25, %v1168_v5 }
 0x45a   : > { %v2647_v8 = vpop.f32.mrf.mxu1 }
 0x45b   : > { %v1175_v10 = vsel %vm3218_vm8, %v1172_v7, -1e+30 }
 0x45c   : > { %v1177_v11 = vsel %vm1176_vm9, %v1175_v10, -inf }
 0x45d   : > { %1178 = vmax.xlane.f32.xlu0 %v1177_v11  ;;  %v1700_v11 = vrot.slane %v3199_v61, 6 }
 0x468   : > { %v1366_v12 = vpop.f32.mrf.mxu1 }
 0x469   : > { %v1370_v14 = vmul.f32 0.25, %v1366_v12 }
 0x46a   : > { %v2669_v15 = vpop.f32.mrf.mxu1 }
 0x46b   : > { %v1371_v16 = vsel %vm3218_vm8, %v1370_v14, -1e+30 }
 0x46c   : > { %v1372_v17 = vsel %vm1176_vm9, %v1371_v16, -inf }
 0x46d   : > { %1373 = vmax.xlane.f32.xlu1 %v1372_v17 }
 0x47e   : > { %1393 = vrot.lane.b32.xlu1 %v3228_v18, %s2861_s27 }
 0x482   : > { %1389 = vrot.lane.b32.xlu1 %v3238_v20, %s2861_s27 }
 0x486   : > { %1387 = vrot.lane.b32.xlu1 %v3243_v22, %s2861_s27 }
 0x48a   : > { %1500 = vrot.lane.b32.xlu1 %v3165_v55, %s2860_s22 }
 0x48e   : > { %1496 = vrot.lane.b32.xlu1 %v3180_v57, %s2860_s22 }
 0x492   : > { %1605 = vrot.lane.b32.xlu1 %v3233_v19, %s2860_s22 }
 0x496   : > { %1601 = vrot.lane.b32.xlu1 %v3243_v22, %s2860_s22 }
 0x4e6   : > { %v1179_v23 = vpop.xlane.xlu0 %1178 }
 0x4e7   : > { %v1180_v24 = vsub.f32 %v1175_v10, %v1179_v23 }
 0x4e9   : > { %v1181_v25 = vmul.f32 1.442695, %v1180_v24 }
 0x4eb   : > { %2806 = vpow2.f32 %v1181_v25 }
 0x4f6   : > { %v1374_v28 = vpop.xlane.xlu1 %1373 }
 0x4f7   : > { %v1375_v29 = vsub.f32 %v1371_v16, %v1374_v28 }
 0x4f8   : > { %v2807_v26 = vpop.eup %2806 }
 0x4f9   : > { %v1183_v27 = vsel %vm1176_vm9, %v2807_v26, 0.0  ;;  %v1376_v30 = vmul.f32 1.442695, %v1375_v29 }
 0x4fa   : > { %1184 = vadd.xlane.f32.xlu0 %v1183_v27  ;;  %v1394_v34 = vpop.permute.xlu1 %1393 }
 0x4fb   : > { %2808 = vpow2.f32 %v1376_v30 }
 0x4fe   : > { %v1390_v37 = vpop.permute.xlu1 %1389 }
 0x502   : > { %v1388_v39 = vpop.permute.xlu1 %1387 }
 0x506   : > { %v1501_v44 = vpop.permute.xlu1 %1500 }
 0x508   : > { %v2809_v31 = vpop.eup %2808 }
 0x509   : > { %v1378_v32 = vsel %vm1176_vm9, %v2809_v31, 0.0 }
 0x50a   : > { %v1497_v46 = vpop.permute.xlu1 %1496 }
 0x50e   : > { %v1606_v63 = vpop.permute.xlu1 %1605 }
 0x510   : > { %1391 = vrot.lane.b32.xlu0 %v3233_v19, %s2861_s27 }
 0x512   : > { %v1602_v3 = vpop.permute.xlu1 %1601 }
 0x52f   : > { %1379 = vadd.xlane.f32.xlu0 %v1378_v32 }
 0x545   : > { %1502 = vrot.lane.b32.xlu0 %v3155_v54, %s2860_s22 }
 0x549   : > { %1498 = vrot.lane.b32.xlu0 %v3178_v56, %s2860_s22 }
 0x583   : > { %v1185_v33 = vpop.xlane.xlu0 %1184 }
 0x584   : > { %2810 = vrcp.f32 %v1185_v33 }
 0x587   : > { %v1392_v38 = vpop.permute.xlu0 %1391 }
 0x591   : > { %v2811_v35 = vpop.eup %2810 }
 0x592   : > { %v1187_v21 = vmul.f32 %v2811_v35, %v2807_v26 }
 0x594   : > { %2657 = vmatmul.mubr.msk.f32.vlgmr.msra.gmra.mxu0 %vm1188_vm10, %v1187_v21  ;;  %v1911_v21 = vld [vmem:[%s2991_s18 + $0x30] sm:$0xff] }
 0x595   : > { %2671 = vmatpush3.msra.mxu0 %v1394_v34  ;;  %2678 = vmatprep.mubr.msk.f32.mxu0 %vm2847_vm2, %v2846_v13 }
 0x596   : > { %2672 = vmatprep.subr.mxu0 %v2846_v13 }
 0x597   : > { %2673 = vmatpush3.msra.mxu0 %v1392_v38  ;;  %v1909_v38 = vld [vmem:[%s2991_s18 + $0x20] sm:$0xff] }
 0x598   : > { %2674 = vmatprep.subr.mxu0 %v2846_v13 }
 0x599   : > { %2675 = vmatpush3.msra.mxu0 %v1390_v37  ;;  %v1910_v37 = vld [vmem:[%s2991_s18 + $0x28] sm:$0xff] }
 0x59a   : > { %2676 = vmatprep.subr.mxu0 %v2846_v13 }
 0x59b   : > { %2677 = vmatpush3.msra.mxu0 %v1388_v39  ;;  %v1908_v39 = vld [vmem:[%s2991_s18 + $0x18] sm:$0xff] }
 0x59c   : > { %2681 = vmatprep.subr.mxu0 %v2846_v13 }
 0x5b8   : > { %v1380_v40 = vpop.xlane.xlu0 %1379 }
 0x5b9   : > { %2812 = vrcp.f32 %v1380_v40  ;;  %v1907_v40 = vld [vmem:[%s2991_s18 + $0x10] sm:$0xff] }
 0x5bc   : > { %v1503_v42 = vpop.permute.xlu0 %1502 }
 0x5c0   : > { %v1499_v45 = vpop.permute.xlu0 %1498 }
 0x5c6   : > { %v2813_v41 = vpop.eup %2812 }
 0x5c7   : > { %v1382_v43 = vmul.f32 %v2813_v41, %v2809_v31  ;;  %v1906_v41 = vld [vmem:[%s2991_s18 + $0x8] sm:$0xff] }
 0x5c9   : > { %2679 = vmatmul.mubr.msk.f32.vlgmr.msra.gmra.mxu0 %vm1188_vm10, %v1382_v43 }
 0x5ca   : > { %2682 = vmatpush3.xpose.msk.msra.mxu0 %vm1086_vm5, %v1503_v42  ;;  %2689 = vmatprep.mubr.msk.f32.mxu0 %vm2847_vm2, %v2846_v13  ;;  %v1905_v42 = vld [vmem:[%s2991_s18] sm:$0xff] }
 0x5cb   : > { %2683 = vmatprep.subr.mxu0 %v2846_v13 }
 0x5ce   : > { %2684 = vmatpush3.xpose.msk.msra.mxu0 %vm1086_vm5, %v1501_v44 }
 0x5cf   : > { %2685 = vmatprep.subr.mxu0 %v2846_v13 }
 0x5d2   : > { %2686 = vmatpush3.xpose.msk.msra.mxu0 %vm1086_vm5, %v1499_v45 }
 0x5d3   : > { %2687 = vmatprep.subr.mxu0 %v2846_v13 }
 0x5d6   : > { %2688 = vmatpush3.xpose.msk.msra.mxu0 %vm1086_vm5, %v1497_v46 }
 0x5d7   : > { %2714 = vmatprep.subr.mxu0 %v2846_v13 }
 0x5d9   : > { %2690 = vmatmul.mubr.msk.f32.vlgmr.msra.gmra.mxu0 %vm1086_vm5, %v1491_v47 }
 0x5da   : > { %2722 = vmatprep.mubr.msk.f32.mxu0 %vm2847_vm2, %v2846_v13 }
 0x654   : > { %v3288_v48 = vpop.f32.mrf.mxu0 }
 0x655   : > { %1262 = vst.msk [vmem:[#allocation5] sm:$0x1] %vm1057_vm7, %v3288_v48 }
 0x656   : > { %v2658_v49 = vpop.f32.mrf.mxu0 }
 0x689   : > { %v3292_v36 = vpop.f32.mrf.mxu0 }
 0x68b   : > { %v2680_v50 = vpop.f32.mrf.mxu0 }
 0x699   : > { %v1580_v51 = vpop.f32.mrf.mxu0 }
 0x69a   : > { %v1584_v52 = vmul.f32 0.25, %v1580_v51 }
 0x69b   : > { %v2691_v53 = vpop.f32.mrf.mxu0 }
 0x69c   : > { %v1585_v58 = vsel %vm3218_vm8, %v1584_v52, -1e+30  ;;  %v2018_v52 = vld [vmem:[%s3001_s29 + $0x78] sm:$0xff]  ;;  %v2017_v53 = vld [vmem:[%s3001_s29 + $0x70] sm:$0xff] }
 0x69d   : > { %v1586_v59 = vsel %vm1176_vm9, %v1585_v58, -inf }
 0x69e   : > { %1587 = vmax.xlane.f32.xlu0 %v1586_v59  ;;  %v2015_v59 = vld [vmem:[%s3001_s29 + $0x60] sm:$0xff] }
 0x6b4   : > { %1607 = vrot.lane.b32.xlu0 %v3228_v18, %s2860_s22 }
 0x6b8   : > { %1603 = vrot.lane.b32.xlu0 %v3238_v20, %s2860_s22 }
 0x6bc   : > { %1711 = vrot.lane.b32.xlu0 %v3155_v54, %s2859_s21 }
 0x6c0   : > { %1707 = vrot.lane.b32.xlu0 %v3178_v56, %s2859_s21 }
 0x727   : > { %v1588_v60 = vpop.xlane.xlu0 %1587 }
 0x728   : > { %v1589_v62 = vsub.f32 %v1585_v58, %v1588_v60  ;;  %v2016_v58 = vld [vmem:[%s3001_s29 + $0x68] sm:$0xff]  ;;  %v2013_v60 = vld [vmem:[%s3001_s29 + $0x50] sm:$0xff] }
 0x72a   : > { %v1590_v0 = vmul.f32 1.442695, %v1589_v62  ;;  %v2012_v62 = vld [vmem:[%s3001_s29 + $0x48] sm:$0xff] }
 0x72b   : > { %v1608_v1 = vpop.permute.xlu0 %1607 }
 0x72c   : > { %2814 = vpow2.f32 %v1590_v0  ;;  %2693 = vmatpush3.msra.mxu1 %v1608_v1  ;;  %v2010_v0 = vld [vmem:[%s3001_s29 + $0x38] sm:$0xff]  ;;  %v2009_v1 = vld [vmem:[%s3001_s29 + $0x30] sm:$0xff] }
 0x72d   : > { %2694 = vmatprep.subr.mxu1 %v2846_v13 }
 0x72e   : > { %2695 = vmatpush3.msra.mxu1 %v1606_v63  ;;  %v2011_v63 = vld [vmem:[%s3001_s29 + $0x40] sm:$0xff] }
 0x72f   : > { %v1604_v2 = vpop.permute.xlu0 %1603  ;;  %2696 = vmatprep.subr.mxu1 %v2846_v13 }
 0x730   : > { %2697 = vmatpush3.msra.mxu1 %v1604_v2  ;;  %v2008_v2 = vld [vmem:[%s3001_s29 + $0x28] sm:$0xff] }
 0x731   : > { %2698 = vmatprep.subr.mxu1 %v2846_v13 }
 0x732   : > { %2699 = vmatpush3.msra.mxu1 %v1602_v3  ;;  %v2007_v3 = vld [vmem:[%s3001_s29 + $0x20] sm:$0xff] }
 0x733   : > { %2703 = vmatprep.subr.mxu1 %v2846_v13  ;;  %v1712_v7 = vpop.permute.xlu0 %1711 }
 0x739   : > { %v2815_v54 = vpop.eup %2814 }
 0x73a   : > { %v1592_v56 = vsel %vm1176_vm9, %v2815_v54, 0.0 }
 0x73b   : > { %1593 = vadd.xlane.f32.xlu1 %v1592_v56  ;;  %v2005_v56 = vld [vmem:[%s3001_s29 + $0x10] sm:$0xff] }
 0x74c   : > { %1709 = vrot.lane.b32.xlu1 %v3165_v55, %s2859_s21 }
 0x750   : > { %1705 = vrot.lane.b32.xlu1 %v3180_v57, %s2859_s21  ;;  %v1708_v57 = vpop.permute.xlu0 %1707 }
 0x754   : > { %1814 = vrot.lane.b32.xlu1 %v3233_v19, %s2859_s21 }
 0x7c4   : > { %v1594_v4 = vpop.xlane.xlu1 %1593 }
 0x7c5   : > { %2816 = vrcp.f32 %v1594_v4  ;;  %v2004_v4 = vld [vmem:[%s3001_s29 + $0x8] sm:$0xff] }
 0x7c8   : > { %v1710_v55 = vpop.permute.xlu1 %1709 }
 0x7cc   : > { %v1706_v10 = vpop.permute.xlu1 %1705 }
 0x7d0   : > { %v1815_v26 = vpop.permute.xlu1 %1814 }
 0x7d2   : > { %v2817_v5 = vpop.eup %2816 }
 0x7d3   : > { %v1596_v8 = vmul.f32 %v2817_v5, %v2815_v54  ;;  %v2006_v54 = vld [vmem:[%s3001_s29 + $0x18] sm:$0xff]  ;;  %v2003_v5 = vld [vmem:[%s3001_s29] sm:$0xff] }
 0x7d5   : > { %2701 = vmatmul.mubr.msk.f32.vlgmr.msra.gmra.mxu1 %vm1188_vm10, %v1596_v8 }
 0x7d6   : > { %2704 = vmatpush3.xpose.msk.msra.mxu1 %vm1086_vm5, %v1712_v7  ;;  %2711 = vmatprep.mubr.msk.f32.mxu1 %vm2847_vm2, %v2846_v13 }
 0x7d7   : > { %2705 = vmatprep.subr.mxu1 %v2846_v13 }
 0x7da   : > { %2706 = vmatpush3.xpose.msk.msra.mxu1 %vm1086_vm5, %v1710_v55 }
 0x7db   : > { %2707 = vmatprep.subr.mxu1 %v2846_v13 }
 0x7de   : > { %2708 = vmatpush3.xpose.msk.msra.mxu1 %vm1086_vm5, %v1708_v57 }
 0x7df   : > { %2709 = vmatprep.subr.mxu1 %v2846_v13 }
 0x7e2   : > { %2710 = vmatpush3.xpose.msk.msra.mxu1 %vm1086_vm5, %v1706_v10 }
 0x7e3   : > { %2038 = vmatprep.subr.mxu1 %v2018_v52 }
 0x7e5   : > { %2712 = vmatmul.mubr.msk.f32.vlgmr.msra.gmra.mxu1 %vm1086_vm5, %v1700_v11 }
 0x7e6   : > { %2086 = vmatprep.mubr.f32.mxu1 %v2846_v13  ;;  %2039 = vmatpush1.msra.mxu1 %v2017_v53 }
 0x7e7   : > { %2040 = vmatprep.subr.mxu1 %v2016_v58 }
 0x7e8   : > { %2041 = vmatpush1.msra.mxu1 %v2015_v59 }
 0x895   : > { %v1682_v12 = vpop.f32.mrf.mxu1 }
 0x896   : > { %1686 = vst.msk [vmem:[#allocation5 + $0x1] sm:$0x1] %vm1057_vm7, %v1682_v12 }
 0x897   : > { %v2702_v14 = vpop.f32.mrf.mxu1 }
 0x898   : > { %v2116_v14 = vld [vmem:[%s3006_s0 + $0x78] sm:$0xff] }
 0x8a5   : > { %v1789_v15 = vpop.f32.mrf.mxu1 }
 0x8a6   : > { %v1793_v16 = vmul.f32 0.25, %v1789_v15  ;;  %v2115_v15 = vld [vmem:[%s3006_s0 + $0x70] sm:$0xff] }
 0x8a7   : > { %v2713_v17 = vpop.f32.mrf.mxu1 }
 0x8a8   : > { %v1794_v19 = vsel %vm3218_vm8, %v1793_v16, -1e+30  ;;  %v2114_v16 = vld [vmem:[%s3006_s0 + $0x68] sm:$0xff]  ;;  %v2113_v17 = vld [vmem:[%s3006_s0 + $0x60] sm:$0xff] }
 0x8a9   : > { %v1795_v23 = vsel %vm1176_vm9, %v1794_v19, -inf }
 0x8aa   : > { %1796 = vmax.xlane.f32.xlu0 %v1795_v23  ;;  %v2111_v23 = vld [vmem:[%s3006_s0 + $0x50] sm:$0xff] }
 0x8c0   : > { %1816 = vrot.lane.b32.xlu0 %v3228_v18, %s2859_s21 }
 0x8c4   : > { %1812 = vrot.lane.b32.xlu0 %v3238_v20, %s2859_s21 }
 0x8c8   : > { %1264 = vrot.lane.b32.xlu0 %v3288_v48, %s2856_s19 }
 0x8cc   : > { %1473 = vrot.lane.b32.xlu0 %v3292_v36, %s3538_s10 }
 0x8d0   : > { %1478 = vrot.lane.b32.xlu0 %v3292_v36, %s3539_s26 }
 0x933   : > { %v1797_v61 = vpop.xlane.xlu0 %1796 }
 0x934   : > { %v1798_v6 = vsub.f32 %v1794_v19, %v1797_v61  ;;  %v2112_v19 = vld [vmem:[%s3006_s0 + $0x58] sm:$0xff]  ;;  %v2110_v61 = vld [vmem:[%s3006_s0 + $0x48] sm:$0xff] }
 0x936   : > { %v1799_v24 = vmul.f32 1.442695, %v1798_v6  ;;  %v2109_v6 = vld [vmem:[%s3006_s0 + $0x40] sm:$0xff] }
 0x937   : > { %v1817_v25 = vpop.permute.xlu0 %1816 }
 0x938   : > { %2818 = vpow2.f32 %v1799_v24  ;;  %2715 = vmatpush3.msra.mxu0 %v1817_v25  ;;  %v2108_v24 = vld [vmem:[%s3006_s0 + $0x38] sm:$0xff]  ;;  %v2107_v25 = vld [vmem:[%s3006_s0 + $0x30] sm:$0xff] }
 0x939   : > { %2716 = vmatprep.subr.mxu0 %v2846_v13 }
 0x93a   : > { %2717 = vmatpush3.msra.mxu0 %v1815_v26  ;;  %v2106_v26 = vld [vmem:[%s3006_s0 + $0x28] sm:$0xff] }
 0x93b   : > { %v1813_v18 = vpop.permute.xlu0 %1812  ;;  %2718 = vmatprep.subr.mxu0 %v2846_v13 }
 0x93c   : > { %2719 = vmatpush3.msra.mxu0 %v1813_v18  ;;  %v2105_v18 = vld [vmem:[%s3006_s0 + $0x20] sm:$0xff] }
 0x93d   : > { %2720 = vmatprep.subr.mxu0 %v2846_v13 }
 0x93f   : > { %v1265_v20 = vpop.permute.xlu0 %1264 }
 0x940   : > { %1268 = vst.msk [vmem:[#allocation5 - $0x1] sm:$0x2] %vm1267_vm11, %v1265_v20  ;;  %v2104_v20 = vld [vmem:[%s3006_s0 + $0x18] sm:$0xff] }
 0x943   : > { %v1474_v27 = vpop.permute.xlu0 %1473 }
 0x944   : > { %1477 = vst.msk [vmem:[#allocation5] sm:$0x1] %vm1476_vm12, %v1474_v27  ;;  %v2103_v27 = vld [vmem:[%s3006_s0 + $0x10] sm:$0xff] }
 0x945   : > { %v2819_v28 = vpop.eup %2818 }
 0x946   : > { %v1801_v29 = vsel %vm1176_vm9, %v2819_v28, 0.0 }
 0x947   : > { %1802 = vadd.xlane.f32.xlu1 %v1801_v29  ;;  %v1479_v30 = vpop.permute.xlu0 %1478  ;;  %v2101_v29 = vld [vmem:[%s3006_s0] sm:$0xff] }
 0x948   : > { %1482 = vst.msk [vmem:[#allocation5 - $0x1] sm:$0x2] %vm1481_vm13, %v1479_v30 }
 0x958   : > { %1810 = vrot.lane.b32.xlu1 %v3243_v22, %s2859_s21  ;;  %v1912_v22 = vld [vmem:[%s2991_s18 + $0x38] sm:$0xff] }
 0x95c   : > { %1688 = vrot.lane.b32.xlu1 %v1682_v12, %s2856_s19  ;;  %s3540_s19 = scalar_lea.vmem %s3510_s7, %s2968_s28 }
 0x95d   : > { %v2526_v10 = vld [vmem:[%s3540_s19] ss:$0 sm:$0xff]  ;;  %s3542_s19 = sld [smem:[#allocation23_spill]] (!%p2529_p5) }
 0x9d0   : > { %v1803_v31 = vpop.xlane.xlu1 %1802 }
 0x9d1   : > { %2820 = vrcp.f32 %v1803_v31 }
 0x9d4   : > { %v1811_v32 = vpop.permute.xlu1 %1810 }
 0x9d5   : > { %2721 = vmatpush3.msra.mxu0 %v1811_v32 }
 0x9d6   : > { %2725 = vmatprep.subr.mxu0 %v2846_v13 }
 0x9d8   : > { %v1689_v33 = vpop.permute.xlu1 %1688 }
 0x9d9   : > { %1691 = vst.msk [vmem:[#allocation5] sm:$0x2] %vm1267_vm11, %v1689_v33 }
 0x9de   : > { %v2821_v34 = vpop.eup %2820 }
 0x9df   : > { %v1805_v35 = vmul.f32 %v2821_v34, %v2819_v28  ;;  %v2102_v28 = vld [vmem:[%s3006_s0 + $0x8] sm:$0xff] }
 0x9e1   : > { %2723 = vmatmul.mubr.msk.f32.vlgmr.msra.gmra.mxu0 %vm1188_vm10, %v1805_v35 }
 0x9e2   : > { %2741 = vmatprep.mubr.msk.f32.mxu0 %vm2847_vm2, %v2846_v13  ;;  %2726 = vmatpush3.msra.mxu0 %v1912_v22 }
 0x9e3   : > { %2727 = vmatprep.subr.mxu0 %v2846_v13 }
 0x9e4   : > { %2728 = vmatpush3.msra.mxu0 %v1911_v21 }
 0x9e5   : > { %2729 = vmatprep.subr.mxu0 %v2846_v13 }
 0x9e6   : > { %2730 = vmatpush3.msra.mxu0 %v1910_v37 }
 0x9e7   : > { %2731 = vmatprep.subr.mxu0 %v2846_v13 }
 0x9e8   : > { %2732 = vmatpush3.msra.mxu0 %v1909_v38 }
 0x9e9   : > { %2733 = vmatprep.subr.mxu0 %v2846_v13 }
 0x9ea   : > { %2734 = vmatpush3.msra.mxu0 %v1908_v39 }
 0x9eb   : > { %2735 = vmatprep.subr.mxu0 %v2846_v13 }
 0x9ec   : > { %2736 = vmatpush3.msra.mxu0 %v1907_v40 }
 0x9ed   : > { %2737 = vmatprep.subr.mxu0 %v2846_v13 }
 0x9ee   : > { %2738 = vmatpush3.msra.mxu0 %v1906_v41 }
 0x9ef   : > { %2739 = vmatprep.subr.mxu0 %v2846_v13 }
 0x9f0   : > { %2740 = vmatpush3.msra.mxu0 %v1905_v42 }
 0x9f1   : > { %2744 = vmatprep.subr.mxu0 %v2846_v13 }
 0xaa1   : > { %v1891_v43 = vpop.f32.mrf.mxu0 }
 0xaa2   : > { %1896 = vrot.lane.b32.xlu1 %v1891_v43, %s3538_s10 }
 0xaa3   : > { %v2724_v44 = vpop.f32.mrf.mxu0 }
 0xaa6   : > { %1900 = vrot.lane.b32.xlu1 %v1891_v43, %s3539_s26  ;;  %s3541_s26 = sld [smem:[#allocation21_spill]] (!%p2529_p5) }
 0xb14   : > { %v1897_v45 = vpop.permute.xlu1 %1896 }
 0xb15   : > { %1899 = vst.msk [vmem:[#allocation5 + $0x1] sm:$0x1] %vm1476_vm12, %v1897_v45 }
 0xb18   : > { %v1901_v46 = vpop.permute.xlu1 %1900 }
 0xb19   : > { %1903 = vst.msk [vmem:[#allocation5] sm:$0x2] %vm1481_vm13, %v1901_v46 }
 0xb20   : > { %v1904_v47 = vld [vmem:[#allocation5] sm:$0x3] }
 0xb21   : > { %2742 = vmatmul.mubr.msk.f32.vlgmr.msra.gmra.mxu0 %vm651_vm3, %v1904_v47 }
 0xb22   : > { %2776 = vmatprep.mubr.msk.f32.mxu0 %vm2847_vm2, %v2846_v13  ;;  %2745 = vmatpush3.msra.mxu0 %v2116_v14 }
 0xb23   : > { %2746 = vmatprep.subr.mxu0 %v2846_v13 }
 0xb24   : > { %2747 = vmatpush3.msra.mxu0 %v2115_v15 }
 0xb25   : > { %2748 = vmatprep.subr.mxu0 %v2846_v13 }
 0xb26   : > { %2749 = vmatpush3.msra.mxu0 %v2114_v16 }
 0xb27   : > { %2750 = vmatprep.subr.mxu0 %v2846_v13 }
 0xb28   : > { %2751 = vmatpush3.msra.mxu0 %v2113_v17 }
 0xb29   : > { %2752 = vmatprep.subr.mxu0 %v2846_v13 }
 0xb2a   : > { %2753 = vmatpush3.msra.mxu0 %v2112_v19 }
 0xb2b   : > { %2754 = vmatprep.subr.mxu0 %v2846_v13 }
 0xb2c   : > { %2755 = vmatpush3.msra.mxu0 %v2111_v23 }
 0xb2d   : > { %2756 = vmatprep.subr.mxu0 %v2846_v13 }
 0xb2e   : > { %2757 = vmatpush3.msra.mxu0 %v2110_v61 }
 0xb2f   : > { %2758 = vmatprep.subr.mxu0 %v2846_v13 }
 0xb30   : > { %2759 = vmatpush3.msra.mxu0 %v2109_v6 }
 0xb31   : > { %2760 = vmatprep.subr.mxu0 %v2846_v13 }
 0xb32   : > { %2761 = vmatpush3.msra.mxu0 %v2108_v24 }
 0xb33   : > { %2762 = vmatprep.subr.mxu0 %v2846_v13 }
 0xb34   : > { %2763 = vmatpush3.msra.mxu0 %v2107_v25 }
 0xb35   : > { %2764 = vmatprep.subr.mxu0 %v2846_v13 }
 0xb36   : > { %2765 = vmatpush3.msra.mxu0 %v2106_v26 }
 0xb37   : > { %2766 = vmatprep.subr.mxu0 %v2846_v13 }
 0xb38   : > { %2767 = vmatpush3.msra.mxu0 %v2105_v18 }
 0xb39   : > { %2768 = vmatprep.subr.mxu0 %v2846_v13 }
 0xb3a   : > { %2769 = vmatpush3.msra.mxu0 %v2104_v20 }
 0xb3b   : > { %2770 = vmatprep.subr.mxu0 %v2846_v13 }
 0xb3c   : > { %2771 = vmatpush3.msra.mxu0 %v2103_v27 }
 0xb3d   : > { %2772 = vmatprep.subr.mxu0 %v2846_v13 }
 0xb3e   : > { %2773 = vmatpush3.msra.mxu0 %v2102_v28 }
 0xb3f   : > { %2774 = vmatprep.subr.mxu0 %v2846_v13 }
 0xb40   : > { %2775 = vmatpush3.msra.mxu0 %v2101_v29 }
 0xbe1   : > { %v1982_v48 = vpop.f32.mrf.mxu0 }
 0xbe2   : > { %v3382_v49 = vadd.f32 %v1982_v48, %v3016_v9  ;;  %v2014_v9 = vld [vmem:[%s3001_s29 + $0x58] sm:$0xff] }
 0xbe3   : > { %v2743_v36 = vpop.f32.mrf.mxu0  ;;  %2042 = vmatprep.subr.mxu1 %v2014_v9 }
 0xbe4   : > { %v1987_v50 = vmul.f32 %v3382_v49, %v3382_v49  ;;  %2043 = vmatpush1.msra.mxu1 %v2013_v60 }
 0xbe5   : > { %2044 = vmatprep.subr.mxu1 %v2012_v62 }
 0xbe6   : > { %v1988_v51 = vsel %vm619_vm1, %v1987_v50, 0.0  ;;  %2045 = vmatpush1.msra.mxu1 %v2011_v63 }
 0xbe7   : > { %1989 = vadd.xlane.f32.xlu0 %v1988_v51  ;;  %2046 = vmatprep.subr.mxu1 %v2010_v0 }
 0xbe8   : > { %2047 = vmatpush1.msra.mxu1 %v2009_v1 }
 0xbe9   : > { %2048 = vmatprep.subr.mxu1 %v2008_v2 }
 0xbea   : > { %2049 = vmatpush1.msra.mxu1 %v2007_v3 }
 0xbeb   : > { %2050 = vmatprep.subr.mxu1 %v2006_v54 }
 0xbec   : > { %2051 = vmatpush1.msra.mxu1 %v2005_v56 }
 0xbed   : > { %2052 = vmatprep.subr.mxu1 %v2004_v4 }
 0xbee   : > { %2053 = vmatpush1.msra.mxu1 %v2003_v5 }
 0xc70   : > { %v1990_v7 = vpop.xlane.xlu0 %1989 }
 0xc71   : > { %v1991_v8 = vmul.f32 0.015625, %v1990_v7 }
 0xc73   : > { %v1992_v55 = vadd.f32 1e-06, %v1991_v8 }
 0xc75   : > { %2822 = vrsqrt.f32 %v1992_v55 }
 0xc82   : > { %v2823_v57 = vpop.eup %2822 }
 0xc83   : > { %v1994_v11 = vmul.f32 %v2823_v57, %v3382_v49 }
 0xc85   : > { %v2002_v12 = vmul.f32 %v2526_v10, %v1994_v11 }
 0xc87   : > { %2527 = vmatmul.mubr.msk.f32.vlgmr.msra.gmra.mxu1 %vm651_vm3, %v2002_v12 }
 0xd47   : > { %v2088_v30 = vpop.f32.mrf.mxu1 }
 0xd48   : > { %v2528_v31 = vmul.f32 -1.442695, %v2088_v30 }
 0xd49   : > { %v2090_v22 = vpop.f32.mrf.mxu1 }
 0xd4a   : > { %2824 = vpow2.f32 %v2528_v31 }
 0xd57   : > { %v2825_v32 = vpop.eup %2824 }
 0xd58   : > { %v2096_v33 = vadd.f32 1.0, %v2825_v32 }
 0xd5a   : > { %2826 = vrcp.f32 %v2096_v33 }
 0xd67   : > { %v2827_v34 = vpop.eup %2826 }
 0xd68   : > { %v2099_v35 = vmul.f32 %v2827_v34, %v2088_v30 }
 0xd6a   : > { %v2100_v21 = vmul.f32 %v2099_v35, %v2090_v22 }
 0xd6c   : > { %2777 = vmatmul.mubr.f32.vlgmr.msra.gmra.mxu0 %v2100_v21 }
 0xe2b   : > { %2192 = sbr.rel (%p2529_p5) target bundleno = 3993 (0xf99), region = 204 }
 0xe2c   : > { %v2183_v37 = vpop.f32.mrf.mxu0 }
 0xe2d   : > { %v2187_v38 = vadd.f32 %v2183_v37, %v3382_v49 }
 0xe2e   : > { %v2778_v39 = vpop.f32.mrf.mxu0 }
 0xe2f   : > { %2188 = vst.msk [vmem:[#allocation2] sm:$0x3] %vm619_vm1, %v2187_v38 }
 0xe30   : > { %v2193_v13 = vmul.f32 %v2187_v38, %v2187_v38  ;;  %v2224_v41 = vld [vmem:[%s3514_s11 + $0x78] sm:$0xff]  ;;  %v2223_v42 = vld [vmem:[%s3514_s11 + $0x70] sm:$0xff]  ;;  %v2222_v43 = vld [vmem:[%s3514_s11 + $0x68] sm:$0xff]  ;;  %v2862_v9 = vmov 0.0  }
 0xe31   : > { %2244 = vmatprep.subr.mxu0 %v2224_v41  ;;  %v2221_v44 = vld [vmem:[%s3514_s11 + $0x60] sm:$0xff]  ;;  %v2220_v45 = vld [vmem:[%s3514_s11 + $0x58] sm:$0xff]  ;;  %v2219_v46 = vld [vmem:[%s3514_s11 + $0x50] sm:$0xff]  ;;  %2292 = vmatprep.mubr.f32.mxu0 %v2862_v9 }
 0xe32   : > { %v2194_v40 = vsel %vm619_vm1, %v2193_v13, 0.0  ;;  %2245 = vmatpush1.msra.mxu0 %v2223_v42  ;;  %v2218_v47 = vld [vmem:[%s3514_s11 + $0x48] sm:$0xff]  ;;  %v2217_v48 = vld [vmem:[%s3514_s11 + $0x40] sm:$0xff]  ;;  %v2216_v49 = vld [vmem:[%s3514_s11 + $0x38] sm:$0xff] }
 0xe33   : > { %2195 = vadd.xlane.f32.xlu0 %v2194_v40  ;;  %2246 = vmatprep.subr.mxu0 %v2222_v43  ;;  %v2215_v36 = vld [vmem:[%s3514_s11 + $0x30] sm:$0xff]  ;;  %v2214_v50 = vld [vmem:[%s3514_s11 + $0x28] sm:$0xff]  ;;  %v2213_v51 = vld [vmem:[%s3514_s11 + $0x20] sm:$0xff] }
 0xe34   : > { %2247 = vmatpush1.msra.mxu0 %v2221_v44  ;;  %v2212_v52 = vld [vmem:[%s3514_s11 + $0x18] sm:$0xff]  ;;  %v2211_v53 = vld [vmem:[%s3514_s11 + $0x10] sm:$0xff]  ;;  %v2210_v58 = vld [vmem:[%s3514_s11 + $0x8] sm:$0xff] }
 0xe35   : > { %2248 = vmatprep.subr.mxu0 %v2220_v45  ;;  %v2209_v59 = vld [vmem:[%s3514_s11] sm:$0xff] }
 0xe36   : > { %2249 = vmatpush1.msra.mxu0 %v2219_v46  ;;  %v2530_v1 = vld [vmem:[%s3541_s26] ss:$0 sm:$0xff] }
 0xe37   : > { %2250 = vmatprep.subr.mxu0 %v2218_v47 }
 0xe38   : > { %2251 = vmatpush1.msra.mxu0 %v2217_v48 }
 0xe39   : > { %2252 = vmatprep.subr.mxu0 %v2216_v49 }
 0xe3a   : > { %2253 = vmatpush1.msra.mxu0 %v2215_v36 }
 0xe3b   : > { %2254 = vmatprep.subr.mxu0 %v2214_v50 }
 0xe3c   : > { %2255 = vmatpush1.msra.mxu0 %v2213_v51 }
 0xe3d   : > { %2256 = vmatprep.subr.mxu0 %v2212_v52 }
 0xe3e   : > { %2257 = vmatpush1.msra.mxu0 %v2211_v53 }
 0xe3f   : > { %2258 = vmatprep.subr.mxu0 %v2210_v58 }
 0xe40   : > { %2259 = vmatpush1.msra.mxu0 %v2209_v59 }
 0xebc   : > { %v2196_v60 = vpop.xlane.xlu0 %2195 }
 0xebd   : > { %v2197_v62 = vmul.f32 0.015625, %v2196_v60 }
 0xebf   : > { %v2198_v63 = vadd.f32 1e-06, %v2197_v62 }
 0xec1   : > { %2828 = vrsqrt.f32 %v2198_v63 }
 0xece   : > { %v2829_v0 = vpop.eup %2828 }
 0xecf   : > { %v2200_v2 = vmul.f32 %v2829_v0, %v2187_v38 }
 0xed1   : > { %v2208_v3 = vmul.f32 %v2530_v1, %v2200_v2 }
 0xed3   : > { %2531 = vmatmul.mubr.msk.f32.vlgmr.msra.gmra.mxu0 %vm651_vm3, %v2208_v3 }
 0xf93   : > { %v2294_v54 = vpop.f32.mrf.mxu0 }
 0xf95   : > { %v2296_v56 = vpop.f32.mrf.mxu0 }
 0xf96   : > { %v2301_v4 = vcombine.low %v2294_v54, %v2296_v56 }
 0xf98   : > { %2532 = vst.sshfl [vmem:[%s3542_s19] sm:$0x33 pattern:$0x76325410] %v2301_v4 }
 0xf99 PF: > { %2838 = dma.done.wait [#allocation8 + $0x2], 16 }
 0xf9a   : > { %2839 = vsyncadd [#allocation8 + $0x2], 4294967280 }
 0xf9b   : > { %2840 = dma.done.wait [#allocation8 + $0x3], 16 }
 0xf9c   : > { %2841 = vsyncadd [#allocation8 + $0x3], 4294967280 }
 0xf9d PF: > { %s3543_s28 = sld [smem:[#allocation18_spill]] }
 0xfa3   : > { %s28_s24 = sadd.s32 1, %s3543_s28  }
 0xfa4   : > { %p25_p6 = scmp.ge.s32.totalorder %s28_s24, 4  }
 0xfa6   :  { %27 = sbr.rel (!%p25_p6) target bundleno = 13 (0xd), region = 296 }
 0xfab   :  { %2327 = vsyncmov [#allocation8] }
 0xfae   :  { %s2328_s29 = vpop.sfrf %2327 }
 0xfaf   :  { %p2535_p7 = scmp.ne.s32.totalorder %s2328_s29, 0 }
 0xfb1   :  { %2332 = shalt.err (%p2535_p7)  }
 0xfb2   :  { %2334 = vsyncmov [#allocation8 + $0x1] }
 0xfb5   :  { %s2335_s0 = vpop.sfrf %2334 }
 0xfb6   :  { %p2536_p8 = scmp.ne.s32.totalorder %s2335_s0, 0 }
 0xfb8   :  { %2339 = shalt.err (%p2536_p8)  }
 0xfb9   :  { %2341 = vsyncmov [#allocation8 + $0x2] }
 0xfbc   :  { %s2342_s30 = vpop.sfrf %2341 }
 0xfbd   :  { %p2537_p9 = scmp.ne.s32.totalorder %s2342_s30, 0 }
 0xfbf   :  { %2346 = shalt.err (%p2537_p9)  }
 0xfc0   :  { %2348 = vsyncmov [#allocation8 + $0x3] }
 0xfc3   :  { %s2349_s21 = vpop.sfrf %2348 }
 0xfc4   :  { %p2538_p10 = scmp.ne.s32.totalorder %s2349_s21, 0 }
 0xfc6   :  { %2353 = shalt.err (%p2538_p10)  }

</bundles_post_ra>
